<compile_context>
chip_gen: v7x
topology: tpu7x:2x2x1
jax: 0.10.0
libtpu: 0.0.40
codegen_flags: <defaults>
</compile_context>

<pallas_src>
from functools import partial

import jax
import jax.numpy as jnp
from jax.experimental import pallas as pl
from jax.experimental.pallas import tpu as pltpu


# ----------------------------- in-kernel math helpers -----------------------------

def _erf(x, fast):
    # Abramowitz & Stegun 7.1.26, |err| < 1.5e-7 — matches PyTorch's exact
    # (erf-based) nn.GELU() far below the 2e-4 test tolerance.
    a1, a2, a3, a4, a5 = 0.254829592, -0.284496736, 1.421413741, -1.453152027, 1.061405429
    p = 0.3275911
    s = jnp.where(x >= 0.0, 1.0, -1.0)
    ax = jnp.abs(x)
    denom = 1.0 + p * ax
    # Fast path only: EUP approximate reciprocal (nearly free next to MXU work).
    # Kept off the exact path so the default run still matches PyTorch at 2e-4.
    t = pl.reciprocal(denom, approx=True) if fast else 1.0 / denom
    poly = ((((a5 * t + a4) * t + a3) * t + a2) * t + a1) * t
    return s * (1.0 - poly * jnp.exp(-ax * ax))


def _gelu(x, fast):
    return 0.5 * x * (1.0 + _erf(x * 0.7071067811865475, fast))


def _layernorm(x, gamma, beta, eps=1e-5):
    # PyTorch LayerNorm (population variance, eps inside sqrt); single-pass
    # variance E[x^2] - mu^2 to halve the cross-lane reductions.
    mu = jnp.mean(x, axis=-1, keepdims=True)
    ms = jnp.mean(x * x, axis=-1, keepdims=True)
    return (x - mu) * jax.lax.rsqrt(ms - mu * mu + eps) * gamma + beta


# ----------------------------- fused Pallas kernel -----------------------------

def _mixer_fused_kernel(Bb, T, fast,
                        x_in_ref,
                        ln1g_ref, ln1b_ref, wt1_ref, bt1_ref, wt2_ref, bt2_ref,
                        ln2g_ref, ln2b_ref, wc1_ref, bc1_ref, wc2_ref, bc2_ref,
                        hg_ref, hb_ref, hw_ref, hbias_ref,
                        o_ref, x_scr):
    # grid = (B // Bb, L): axis 0 = batch block ("parallel"), axis 1 = mixer
    # block ("arbitrary", innermost).  x_scr carries the (Bb*T, Hd) activation
    # across the block axis; it is re-initialized at l == 0 for every batch block.
    l = pl.program_id(1)
    last = pl.num_programs(1) - 1
    dot_dt = wt1_ref.dtype                    # f32 (exact) or bf16 (fast) MXU operands
    f32 = jnp.float32

    # ---- load the embedded activations into the VMEM-resident carry at block 0 ----
    @pl.when(l == 0)
    def _():
        for b in range(Bb):
            x_scr[b * T:(b + 1) * T, :] = x_in_ref[b]

    x = x_scr[...]                                                   # (Bb*T, Hd) f32

    # ---- token mixing ("weight on the left": no activation transposes) ----
    y = _layernorm(x, ln1g_ref[0], ln1b_ref[0])                      # (Bb*T, Hd)
    w1, b1 = wt1_ref[0], bt1_ref[0]                                  # (Mt, T), (Mt, 1)
    w2, b2 = wt2_ref[0], bt2_ref[0]                                  # (T, Mt), (T, 1)
    for b in range(Bb):                                              # Bb MXU calls / step
        sl = slice(b * T, (b + 1) * T)
        h = _gelu(jnp.dot(w1, y[sl, :].astype(dot_dt),
                          preferred_element_type=f32) + b1, fast)    # (Mt, Hd)
        x_scr[sl, :] = x[sl, :] + (jnp.dot(w2, h.astype(dot_dt),
                                           preferred_element_type=f32) + b2)
    x = x_scr[...]

    # ---- channel mixing: one (Bb*T, Hd) @ (Hd, Mc) matmul over the batch block ----
    # (For very large Hd*Mc on v7x's 64 MiB VMEM, this dot would be chunked over Mc.)
    y = _layernorm(x, ln2g_ref[0], ln2b_ref[0])
    h = _gelu(jnp.dot(y.astype(dot_dt), wc1_ref[0],
                      preferred_element_type=f32) + bc1_ref[0], fast)        # (Bb*T, Mc)
    x = x + (jnp.dot(h.astype(dot_dt), wc2_ref[0],
                     preferred_element_type=f32) + bc2_ref[0])               # (Bb*T, Hd)
    x_scr[...] = x

    # ---- head (LayerNorm -> per-image mean over tokens -> Linear) at the last block ----
    @pl.when(l == last)
    def _():
        z = _layernorm(x, hg_ref[...], hb_ref[...])                  # (Bb*T, Hd)
        for b in range(Bb):
            m = jnp.mean(z[b * T:(b + 1) * T, :], axis=0, keepdims=True)     # (1, Hd)
            o_ref[0, b:b + 1, :] = (jnp.dot(m, hw_ref[...],
                                            preferred_element_type=f32)
                                    + hbias_ref[...])


# ----------------------------- wrapper -----------------------------

def _choose_batch_block(batch, tokens, target_rows=256):
    # Pick images-per-grid-step so Bb*T fills the MXU M dimension (>=256 rows on
    # v6e/v7x, which also covers v5e's 128), while Bb divides the batch.  Taking
    # the *smallest* divisor >= the target keeps >=2 batch blocks when possible
    # (v7x megacore shards the "parallel" batch axis across its two TensorCores).
    want = max(1, -(-target_rows // tokens))          # ceil(target_rows / tokens)
    if batch <= want:
        return batch
    for bb in range(want, batch + 1):
        if batch % bb == 0:
            return bb
    return batch


def _vmem_limit_bytes():
    # Re-derive the scoped-VMEM budget per chip generation instead of a
    # hard-coded 32 MiB: ~112 MiB on 128-MiB parts (v5e/v6e), ~48 MiB on v7x.
    try:
        cap = int(pltpu.get_tpu_info().vmem_capacity_bytes)
    except Exception:
        cap = 64 * 1024 * 1024
    return max(32 * 1024 * 1024, min(cap - 16 * 1024 * 1024, 112 * 1024 * 1024))


@partial(jax.jit, static_argnames=("patch_size", "batch_block", "use_bf16_dots"))
def mlp_mixer_forward(x_nchw, params, patch_size, batch_block=None, use_bf16_dots=False):
    ph, pw = patch_size
    B, C, Hi, Wi = x_nchw.shape
    Hp, Wp = Hi // ph, Wi // pw
    T = Hp * Wp
    K = C * ph * pw
    Hd = params["embed_w"].shape[1]
    L, Mt, _ = params["wt1"].shape
    Mc = params["wc1"].shape[2]
    num_class = params["head_w"].shape[1]

    # Patch embedding (Conv2d with kernel == stride == patch, no padding) as one
    # batched XLA matmul in the wrapper (review: reclaims VMEM inside the kernel
    # and removes a cold pl.when branch; XLA handles one big matmul well).
    patches = (x_nchw.reshape(B, C, Hp, ph, Wp, pw)
               .transpose(0, 2, 4, 1, 3, 5)
               .reshape(B, T, K)
               .astype(jnp.float32))
    x_emb = patches @ params["embed_w"] + params["embed_b"]            # (B, T, Hd)

    Bb = _choose_batch_block(B, T) if batch_block is None else batch_block
    assert B % Bb == 0, "batch_block must divide the batch"
    nb = B // Bb

    # Optional bf16 weights / MXU operands (accumulation stays f32 in-kernel).
    dot_dtype = jnp.bfloat16 if use_bf16_dots else jnp.float32
    wt1 = params["wt1"].astype(dot_dtype)
    wt2 = params["wt2"].astype(dot_dtype)
    wc1 = params["wc1"].astype(dot_dtype)
    wc2 = params["wc2"].astype(dot_dtype)

    kernel = partial(_mixer_fused_kernel, Bb, T, use_bf16_dots)

    per_batch = lambda b, l: (b, 0, 0)    # streamed by batch block, resident over l
    per_block = lambda b, l: (l, 0, 0)    # streamed by mixer block (amortized over Bb)
    const2 = lambda b, l: (0, 0)          # resident head params

    in_specs = [
        pl.BlockSpec((Bb, T, Hd), per_batch),           # embedded activations
        pl.BlockSpec((1, 1, Hd), per_block),            # ln1 gamma
        pl.BlockSpec((1, 1, Hd), per_block),            # ln1 beta
        pl.BlockSpec((1, Mt, T), per_block),            # token dense_1 W
        pl.BlockSpec((1, Mt, 1), per_block),            # token dense_1 b (column)
        pl.BlockSpec((1, T, Mt), per_block),            # token dense_2 W
        pl.BlockSpec((1, T, 1), per_block),             # token dense_2 b (column)
        pl.BlockSpec((1, 1, Hd), per_block),            # ln2 gamma
        pl.BlockSpec((1, 1, Hd), per_block),            # ln2 beta
        pl.BlockSpec((1, Hd, Mc), per_block),           # channel dense_1 W
        pl.BlockSpec((1, 1, Mc), per_block),            # channel dense_1 b
        pl.BlockSpec((1, Mc, Hd), per_block),           # channel dense_2 W
        pl.BlockSpec((1, 1, Hd), per_block),            # channel dense_2 b
        pl.BlockSpec((1, Hd), const2),                  # head LN gamma
        pl.BlockSpec((1, Hd), const2),                  # head LN beta
        pl.BlockSpec((Hd, num_class), const2),          # head W
        pl.BlockSpec((1, num_class), const2),           # head b
    ]

    out = pl.pallas_call(
        kernel,
        out_shape=jax.ShapeDtypeStruct((nb, Bb, num_class), jnp.float32),
        grid=(nb, L),
        in_specs=in_specs,
        out_specs=pl.BlockSpec((1, Bb, num_class), per_batch),   # lane-dense per batch block
        scratch_shapes=[pltpu.VMEM((Bb * T, Hd), jnp.float32)],  # VMEM-resident activation
        compiler_params=pltpu.CompilerParams(
            dimension_semantics=("parallel", "arbitrary"),
            vmem_limit_bytes=_vmem_limit_bytes()),
    )(x_emb, params["ln1_g"], params["ln1_b"],
      wt1, params["bt1"], wt2, params["bt2"],
      params["ln2_g"], params["ln2_b"],
      wc1, params["bc1"], wc2, params["bc2"],
      params["head_ln_g"], params["head_ln_b"],
      params["head_w"], params["head_b"])

    return out.reshape(B, num_class)


# ----------------------------- parameter init (deterministic, synthetic) -----------------------------
# Layout notes:
#   wt1 (L, Mt, T), wt2 (L, T, Mt) are the PyTorch Linear weights as-is (used
#   weight-on-the-left in the kernel); their biases are column vectors
#   (L, Mt, 1) / (L, T, 1).  Channel-MLP / embed / head weights are stored
#   pre-transposed to (in, out) so the kernel does plain x @ W.

def init_params(key, *, in_dim, hidden_dim, mlp_token_dim, mlp_channel_dim,
                patch_size, img_size, num_block, num_class):
    ph, pw = patch_size
    T = (img_size[0] // ph) * (img_size[1] // pw)
    K = in_dim * ph * pw
    Hd, Mt, Mc, L = hidden_dim, mlp_token_dim, mlp_channel_dim, num_block

    def rand(k, shape, scale=0.1):
        return scale * jax.random.normal(k, shape, jnp.float32)

    keys = jax.random.split(key, 12)
    params = dict(
        embed_w=rand(keys[0], (K, Hd)), embed_b=rand(keys[1], (1, Hd)),
        ln1_g=jnp.ones((L, 1, Hd), jnp.float32), ln1_b=jnp.zeros((L, 1, Hd), jnp.float32),
        wt1=rand(keys[2], (L, Mt, T)), bt1=rand(keys[3], (L, Mt, 1)),
        wt2=rand(keys[4], (L, T, Mt)), bt2=rand(keys[5], (L, T, 1)),
        ln2_g=jnp.ones((L, 1, Hd), jnp.float32), ln2_b=jnp.zeros((L, 1, Hd), jnp.float32),
        wc1=rand(keys[6], (L, Hd, Mc)), bc1=rand(keys[7], (L, 1, Mc)),
        wc2=rand(keys[8], (L, Mc, Hd)), bc2=rand(keys[9], (L, 1, Hd)),
        head_ln_g=jnp.ones((1, Hd), jnp.float32), head_ln_b=jnp.zeros((1, Hd), jnp.float32),
        head_w=rand(keys[10], (Hd, num_class)), head_b=rand(keys[11], (1, num_class)),
    )
    return params


# ----------------------------- pure-JAX reference (PyTorch op order) -----------------------------

def reference_forward(x_nchw, params, patch_size):
    ph, pw = patch_size
    B, C, Hi, Wi = x_nchw.shape
    Hp, Wp = Hi // ph, Wi // pw
    patches = (x_nchw.reshape(B, C, Hp, ph, Wp, pw)
               .transpose(0, 2, 4, 1, 3, 5)
               .reshape(B, Hp * Wp, C * ph * pw))

    def ln(v, g, b):
        mu = v.mean(-1, keepdims=True)
        var = ((v - mu) ** 2).mean(-1, keepdims=True)
        return (v - mu) / jnp.sqrt(var + 1e-5) * g + b

    gelu = lambda v: jax.nn.gelu(v, approximate=False)   # PyTorch nn.GELU() default

    x = patches @ params["embed_w"] + params["embed_b"]
    L = params["wt1"].shape[0]
    for l in range(L):
        y = ln(x, params["ln1_g"][l], params["ln1_b"][l])
        y = jnp.swapaxes(y, 1, 2)                                   # (B, Hd, T)
        y = gelu(y @ params["wt1"][l].T + params["bt1"][l][:, 0])   # (B, Hd, Mt)
        y = y @ params["wt2"][l].T + params["bt2"][l][:, 0]         # (B, Hd, T)
        x = x + jnp.swapaxes(y, 1, 2)
        y = ln(x, params["ln2_g"][l], params["ln2_b"][l])
        x = x + (gelu(y @ params["wc1"][l] + params["bc1"][l]) @ params["wc2"][l]
                 + params["bc2"][l])
    x = ln(x, params["head_ln_g"], params["head_ln_b"])
    x = x.mean(axis=1)
    return x @ params["head_w"] + params["head_b"]


# ----------------------------- main -----------------------------

if __name__ == "__main__":
    in_dim, hidden_dim = 4, 32
    mlp_token_dim, mlp_channel_dim = 64, 64
    patch_size = (4, 4)
    img_size = (16, 16)
    num_block, num_class = 2, 8
    batch = 2

    key = jax.random.PRNGKey(0)
    kx, kp = jax.random.split(key)
    x = jax.random.normal(kx, (batch, in_dim, img_size[0], img_size[1]), jnp.float32)

    params = init_params(kp, in_dim=in_dim, hidden_dim=hidden_dim,
                         mlp_token_dim=mlp_token_dim, mlp_channel_dim=mlp_channel_dim,
                         patch_size=patch_size, img_size=img_size,
                         num_block=num_block, num_class=num_class)

    ref = reference_forward(x, params, patch_size)

    # Exact path (f32 MXU dots, exact reciprocal): must match PyTorch numerics tightly.
    out = mlp_mixer_forward(x, params, patch_size=patch_size)
    out = jax.block_until_ready(out)
    assert out.shape == (batch, num_class)
    max_err = jnp.max(jnp.abs(out - ref))
    assert jnp.allclose(out, ref, atol=2e-4, rtol=2e-4), (
        f"f32 mismatch: max abs err = {max_err}")

    # Fast path (bf16 MXU operands, f32 accumulation, approx-reciprocal GELU):
    # validated at a looser tolerance, as flagged in the perf review.
    out_fast = mlp_mixer_forward(x, params, patch_size=patch_size, use_bf16_dots=True)
    out_fast = jax.block_until_ready(out_fast)
    max_err_fast = jnp.max(jnp.abs(out_fast - ref))
    assert jnp.allclose(out_fast, ref, atol=5e-2, rtol=5e-2), (
        f"bf16 mismatch: max abs err = {max_err_fast}")

    print("KERNEL_OK")
</pallas_src>

<mosaic_0001>
module attributes {stable_mosaic.version = 11 : i64} {
  func.func @_mixer_fused_kernel(%arg0: i32, %arg1: i32, %arg2: memref<2x16x32xf32, #tpu.memory_space<vmem>>, %arg3: memref<1x1x32xf32, #tpu.memory_space<vmem>>, %arg4: memref<1x1x32xf32, #tpu.memory_space<vmem>>, %arg5: memref<1x64x16xf32, #tpu.memory_space<vmem>>, %arg6: memref<1x64x1xf32, #tpu.memory_space<vmem>>, %arg7: memref<1x16x64xf32, #tpu.memory_space<vmem>>, %arg8: memref<1x16x1xf32, #tpu.memory_space<vmem>>, %arg9: memref<1x1x32xf32, #tpu.memory_space<vmem>>, %arg10: memref<1x1x32xf32, #tpu.memory_space<vmem>>, %arg11: memref<1x32x64xf32, #tpu.memory_space<vmem>>, %arg12: memref<1x1x64xf32, #tpu.memory_space<vmem>>, %arg13: memref<1x64x32xf32, #tpu.memory_space<vmem>>, %arg14: memref<1x1x32xf32, #tpu.memory_space<vmem>>, %arg15: memref<1x32xf32, #tpu.memory_space<vmem>>, %arg16: memref<1x32xf32, #tpu.memory_space<vmem>>, %arg17: memref<32x8xf32, #tpu.memory_space<vmem>>, %arg18: memref<1x8xf32, #tpu.memory_space<vmem>>, %arg19: memref<1x2x8xf32, #tpu.memory_space<vmem>>, %arg20: memref<32x32xf32, #tpu.memory_space<vmem>>) attributes {dimension_semantics = [#tpu.dimension_semantics<parallel>, #tpu.dimension_semantics<arbitrary>], iteration_bounds = array<i64: 1, 2>, scalar_prefetch = 0 : i64, scratch_operands = 1 : i64, tpu.core_type = #tpu.core_type<tc>, window_params = [{transform_indices = @transform_0, window_bounds = array<i64: 2, 16, 32>}, {transform_indices = @transform_1, window_bounds = array<i64: 1, 1, 32>}, {transform_indices = @transform_2, window_bounds = array<i64: 1, 1, 32>}, {transform_indices = @transform_3, window_bounds = array<i64: 1, 64, 16>}, {transform_indices = @transform_4, window_bounds = array<i64: 1, 64, 1>}, {transform_indices = @transform_5, window_bounds = array<i64: 1, 16, 64>}, {transform_indices = @transform_6, window_bounds = array<i64: 1, 16, 1>}, {transform_indices = @transform_7, window_bounds = array<i64: 1, 1, 32>}, {transform_indices = @transform_8, window_bounds = array<i64: 1, 1, 32>}, {transform_indices = @transform_9, window_bounds = array<i64: 1, 32, 64>}, {transform_indices = @transform_10, window_bounds = array<i64: 1, 1, 64>}, {transform_indices = @transform_11, window_bounds = array<i64: 1, 64, 32>}, {transform_indices = @transform_12, window_bounds = array<i64: 1, 1, 32>}, {pipeline_mode = #tpu.pipeline_mode<synchronous>, transform_indices = @transform_13, window_bounds = array<i64: 1, 32>}, {pipeline_mode = #tpu.pipeline_mode<synchronous>, transform_indices = @transform_14, window_bounds = array<i64: 1, 32>}, {pipeline_mode = #tpu.pipeline_mode<synchronous>, transform_indices = @transform_15, window_bounds = array<i64: 32, 8>}, {pipeline_mode = #tpu.pipeline_mode<synchronous>, transform_indices = @transform_16, window_bounds = array<i64: 1, 8>}, {transform_indices = @transform_17, window_bounds = array<i64: 1, 2, 8>}]} {
    %c0_i32 = arith.constant 0 : i32
    %0 = arith.cmpi eq, %arg1, %c0_i32 : i32
    %1 = arith.extui %0 : i1 to i32
    %c0_i32_0 = arith.constant 0 : i32
    %2 = arith.cmpi ne, %1, %c0_i32_0 : i32
    scf.if %2 {
      %c0_109 = arith.constant 0 : index
      %c0_110 = arith.constant 0 : index
      %c0_111 = arith.constant 0 : index
      %227 = vector.load %arg2[%c0_109, %c0_110, %c0_111] : memref<2x16x32xf32, #tpu.memory_space<vmem>>, vector<1x16x32xf32>
      %228 = vector.shape_cast %227 : vector<1x16x32xf32> to vector<16x32xf32>
      %c0_112 = arith.constant 0 : index
      %c0_113 = arith.constant 0 : index
      %229 = vector.load %arg20[%c0_112, %c0_113] : memref<32x32xf32, #tpu.memory_space<vmem>>, vector<16x32xf32>
      tpu.vector_store %arg20[%c0_112, %c0_113], %228 {strides = array<i32>} : memref<32x32xf32, #tpu.memory_space<vmem>>, vector<16x32xf32>,
      %c1 = arith.constant 1 : index
      %c0_114 = arith.constant 0 : index
      %c0_115 = arith.constant 0 : index
      %230 = vector.load %arg2[%c1, %c0_114, %c0_115] : memref<2x16x32xf32, #tpu.memory_space<vmem>>, vector<1x16x32xf32>
      %231 = vector.shape_cast %230 : vector<1x16x32xf32> to vector<16x32xf32>
      %c16_116 = arith.constant 16 : index
      %c0_117 = arith.constant 0 : index
      %232 = vector.load %arg20[%c16_116, %c0_117] : memref<32x32xf32, #tpu.memory_space<vmem>>, vector<16x32xf32>
      tpu.vector_store %arg20[%c16_116, %c0_117], %231 {strides = array<i32>} : memref<32x32xf32, #tpu.memory_space<vmem>>, vector<16x32xf32>,
    } else {
    }
    %c0 = arith.constant 0 : index
    %c0_1 = arith.constant 0 : index
    %3 = vector.load %arg20[%c0, %c0_1] : memref<32x32xf32, #tpu.memory_space<vmem>>, vector<32x32xf32>
    %c0_2 = arith.constant 0 : index
    %c0_3 = arith.constant 0 : index
    %c0_4 = arith.constant 0 : index
    %4 = vector.load %arg3[%c0_2, %c0_3, %c0_4] : memref<1x1x32xf32, #tpu.memory_space<vmem>>, vector<1x1x32xf32>
    %5 = vector.shape_cast %4 : vector<1x1x32xf32> to vector<1x32xf32>
    %c0_5 = arith.constant 0 : index
    %c0_6 = arith.constant 0 : index
    %c0_7 = arith.constant 0 : index
    %6 = vector.load %arg4[%c0_5, %c0_6, %c0_7] : memref<1x1x32xf32, #tpu.memory_space<vmem>>, vector<1x1x32xf32>
    %7 = vector.shape_cast %6 : vector<1x1x32xf32> to vector<1x32xf32>
    %cst = arith.constant dense<0.000000e+00> : vector<32xf32>
    %8 = vector.multi_reduction <add>, %3, %cst [1] : vector<32x32xf32> to vector<32xf32>
    %9 = vector.shape_cast %8 : vector<32xf32> to vector<32x1xf32>
    %cst_8 = arith.constant 3.200000e+01 : f32
    %10 = vector.broadcast %cst_8 : f32 to vector<32x1xf32>
    %11 = arith.divf %9, %10 : vector<32x1xf32>
    %12 = arith.mulf %3, %3 : vector<32x32xf32>
    %cst_9 = arith.constant dense<0.000000e+00> : vector<32xf32>
    %13 = vector.multi_reduction <add>, %12, %cst_9 [1] : vector<32x32xf32> to vector<32xf32>
    %14 = vector.shape_cast %13 : vector<32xf32> to vector<32x1xf32>
    %cst_10 = arith.constant 3.200000e+01 : f32
    %15 = vector.broadcast %cst_10 : f32 to vector<32x1xf32>
    %16 = arith.divf %14, %15 : vector<32x1xf32>
    %17 = vector.broadcast %11 : vector<32x1xf32> to vector<32x32xf32>
    %18 = arith.subf %3, %17 : vector<32x32xf32>
    %19 = arith.mulf %11, %11 : vector<32x1xf32>
    %20 = arith.subf %16, %19 : vector<32x1xf32>
    %cst_11 = arith.constant 9.99999974E-6 : f32
    %21 = vector.broadcast %cst_11 : f32 to vector<32x1xf32>
    %22 = arith.addf %20, %21 : vector<32x1xf32>
    %23 = math.rsqrt %22 : vector<32x1xf32>
    %24 = vector.broadcast %23 : vector<32x1xf32> to vector<32x32xf32>
    %25 = arith.mulf %18, %24 : vector<32x32xf32>
    %26 = vector.broadcast %5 : vector<1x32xf32> to vector<32x32xf32>
    %27 = arith.mulf %25, %26 : vector<32x32xf32>
    %28 = vector.broadcast %7 : vector<1x32xf32> to vector<32x32xf32>
    %29 = arith.addf %27, %28 : vector<32x32xf32>
    %c0_12 = arith.constant 0 : index
    %c0_13 = arith.constant 0 : index
    %c0_14 = arith.constant 0 : index
    %30 = vector.load %arg5[%c0_12, %c0_13, %c0_14] : memref<1x64x16xf32, #tpu.memory_space<vmem>>, vector<1x64x16xf32>
    %31 = vector.shape_cast %30 : vector<1x64x16xf32> to vector<64x16xf32>
    %c0_15 = arith.constant 0 : index
    %c0_16 = arith.constant 0 : index
    %c0_17 = arith.constant 0 : index
    %32 = vector.load %arg6[%c0_15, %c0_16, %c0_17] : memref<1x64x1xf32, #tpu.memory_space<vmem>>, vector<1x64x1xf32>
    %33 = vector.shape_cast %32 : vector<1x64x1xf32> to vector<64x1xf32>
    %c0_18 = arith.constant 0 : index
    %c0_19 = arith.constant 0 : index
    %c0_20 = arith.constant 0 : index
    %34 = vector.load %arg7[%c0_18, %c0_19, %c0_20] : memref<1x16x64xf32, #tpu.memory_space<vmem>>, vector<1x16x64xf32>
    %35 = vector.shape_cast %34 : vector<1x16x64xf32> to vector<16x64xf32>
    %c0_21 = arith.constant 0 : index
    %c0_22 = arith.constant 0 : index
    %c0_23 = arith.constant 0 : index
    %36 = vector.load %arg8[%c0_21, %c0_22, %c0_23] : memref<1x16x1xf32, #tpu.memory_space<vmem>>, vector<1x16x1xf32>
    %37 = vector.shape_cast %36 : vector<1x16x1xf32> to vector<16x1xf32>
    %38 = vector.extract_strided_slice %29 {offsets = [0, 0], sizes = [16, 32], strides = [1, 1]} : vector<32x32xf32> to vector<16x32xf32>
    %cst_24 = arith.constant dense<0.000000e+00> : vector<64x32xf32>
    %39 = tpu.matmul %31, %38, %cst_24 {dimension_numbers = #tpu.dot_dimension_numbers<[1], [0], [0], [1], [0, 0, 1, 1], [], []>} : vector<64x16xf32>, vector<16x32xf32>, vector<64x32xf32> -> vector<64x32xf32>
    %40 = vector.broadcast %33 : vector<64x1xf32> to vector<64x32xf32>
    %41 = arith.addf %39, %40 : vector<64x32xf32>
    %cst_25 = arith.constant 5.000000e-01 : f32
    %42 = vector.broadcast %cst_25 : f32 to vector<64x32xf32>
    %43 = arith.mulf %42, %41 : vector<64x32xf32>
    %cst_26 = arith.constant 0.707106769 : f32
    %44 = vector.broadcast %cst_26 : f32 to vector<64x32xf32>
    %45 = arith.mulf %41, %44 : vector<64x32xf32>
    %cst_27 = arith.constant 0.000000e+00 : f32
    %46 = vector.broadcast %cst_27 : f32 to vector<64x32xf32>
    %47 = arith.cmpf oge, %45, %46 : vector<64x32xf32>
    %cst_28 = arith.constant 1.000000e+00 : f32
    %cst_29 = arith.constant -1.000000e+00 : f32
    %48 = vector.broadcast %cst_28 : f32 to vector<64x32xf32>
    %49 = vector.broadcast %cst_29 : f32 to vector<64x32xf32>
    %50 = arith.select %47, %48, %49 : vector<64x32xi1>, vector<64x32xf32>
    %51 = math.absf %45 : vector<64x32xf32>
    %cst_30 = arith.constant 0.327591091 : f32
    %52 = vector.broadcast %cst_30 : f32 to vector<64x32xf32>
    %53 = arith.mulf %52, %51 : vector<64x32xf32>
    %cst_31 = arith.constant 1.000000e+00 : f32
    %54 = vector.broadcast %cst_31 : f32 to vector<64x32xf32>
    %55 = arith.addf %54, %53 : vector<64x32xf32>
    %cst_32 = arith.constant 1.000000e+00 : f32
    %56 = vector.broadcast %cst_32 : f32 to vector<64x32xf32>
    %57 = arith.divf %56, %55 : vector<64x32xf32>
    %cst_33 = arith.constant 1.06140542 : f32
    %58 = vector.broadcast %cst_33 : f32 to vector<64x32xf32>
    %59 = arith.mulf %58, %57 : vector<64x32xf32>
    %cst_34 = arith.constant -1.45315206 : f32
    %60 = vector.broadcast %cst_34 : f32 to vector<64x32xf32>
    %61 = arith.addf %59, %60 : vector<64x32xf32>
    %62 = arith.mulf %61, %57 : vector<64x32xf32>
    %cst_35 = arith.constant 1.42141378 : f32
    %63 = vector.broadcast %cst_35 : f32 to vector<64x32xf32>
    %64 = arith.addf %62, %63 : vector<64x32xf32>
    %65 = arith.mulf %64, %57 : vector<64x32xf32>
    %cst_36 = arith.constant -0.284496725 : f32
    %66 = vector.broadcast %cst_36 : f32 to vector<64x32xf32>
    %67 = arith.addf %65, %66 : vector<64x32xf32>
    %68 = arith.mulf %67, %57 : vector<64x32xf32>
    %cst_37 = arith.constant 0.254829586 : f32
    %69 = vector.broadcast %cst_37 : f32 to vector<64x32xf32>
    %70 = arith.addf %68, %69 : vector<64x32xf32>
    %71 = arith.mulf %70, %57 : vector<64x32xf32>
    %cst_38 = arith.constant 0.000000e+00 : f32
    %72 = vector.broadcast %cst_38 : f32 to vector<64x32xf32>
    %73 = arith.subf %72, %51 : vector<64x32xf32>
    %74 = arith.mulf %73, %51 : vector<64x32xf32>
    %75 = math.exp %74 : vector<64x32xf32>
    %76 = arith.mulf %71, %75 : vector<64x32xf32>
    %cst_39 = arith.constant 1.000000e+00 : f32
    %77 = vector.broadcast %cst_39 : f32 to vector<64x32xf32>
    %78 = arith.subf %77, %76 : vector<64x32xf32>
    %79 = arith.mulf %50, %78 : vector<64x32xf32>
    %cst_40 = arith.constant 1.000000e+00 : f32
    %80 = vector.broadcast %cst_40 : f32 to vector<64x32xf32>
    %81 = arith.addf %80, %79 : vector<64x32xf32>
    %82 = arith.mulf %43, %81 : vector<64x32xf32>
    %83 = vector.extract_strided_slice %3 {offsets = [0, 0], sizes = [16, 32], strides = [1, 1]} : vector<32x32xf32> to vector<16x32xf32>
    %cst_41 = arith.constant dense<0.000000e+00> : vector<16x32xf32>
    %84 = tpu.matmul %35, %82, %cst_41 {dimension_numbers = #tpu.dot_dimension_numbers<[1], [0], [0], [1], [0, 0, 1, 1], [], []>} : vector<16x64xf32>, vector<64x32xf32>, vector<16x32xf32> -> vector<16x32xf32>
    %85 = vector.broadcast %37 : vector<16x1xf32> to vector<16x32xf32>
    %86 = arith.addf %84, %85 : vector<16x32xf32>
    %87 = arith.addf %83, %86 : vector<16x32xf32>
    %c0_42 = arith.constant 0 : index
    %c0_43 = arith.constant 0 : index
    %88 = vector.load %arg20[%c0_42, %c0_43] : memref<32x32xf32, #tpu.memory_space<vmem>>, vector<16x32xf32>
    tpu.vector_store %arg20[%c0_42, %c0_43], %87 {strides = array<i32>} : memref<32x32xf32, #tpu.memory_space<vmem>>, vector<16x32xf32>,
    %89 = vector.extract_strided_slice %29 {offsets = [16, 0], sizes = [16, 32], strides = [1, 1]} : vector<32x32xf32> to vector<16x32xf32>
    %cst_44 = arith.constant dense<0.000000e+00> : vector<64x32xf32>
    %90 = tpu.matmul %31, %89, %cst_44 {dimension_numbers = #tpu.dot_dimension_numbers<[1], [0], [0], [1], [0, 0, 1, 1], [], []>} : vector<64x16xf32>, vector<16x32xf32>, vector<64x32xf32> -> vector<64x32xf32>
    %91 = vector.broadcast %33 : vector<64x1xf32> to vector<64x32xf32>
    %92 = arith.addf %90, %91 : vector<64x32xf32>
    %cst_45 = arith.constant 5.000000e-01 : f32
    %93 = vector.broadcast %cst_45 : f32 to vector<64x32xf32>
    %94 = arith.mulf %93, %92 : vector<64x32xf32>
    %cst_46 = arith.constant 0.707106769 : f32
    %95 = vector.broadcast %cst_46 : f32 to vector<64x32xf32>
    %96 = arith.mulf %92, %95 : vector<64x32xf32>
    %cst_47 = arith.constant 0.000000e+00 : f32
    %97 = vector.broadcast %cst_47 : f32 to vector<64x32xf32>
    %98 = arith.cmpf oge, %96, %97 : vector<64x32xf32>
    %cst_48 = arith.constant 1.000000e+00 : f32
    %cst_49 = arith.constant -1.000000e+00 : f32
    %99 = vector.broadcast %cst_48 : f32 to vector<64x32xf32>
    %100 = vector.broadcast %cst_49 : f32 to vector<64x32xf32>
    %101 = arith.select %98, %99, %100 : vector<64x32xi1>, vector<64x32xf32>
    %102 = math.absf %96 : vector<64x32xf32>
    %cst_50 = arith.constant 0.327591091 : f32
    %103 = vector.broadcast %cst_50 : f32 to vector<64x32xf32>
    %104 = arith.mulf %103, %102 : vector<64x32xf32>
    %cst_51 = arith.constant 1.000000e+00 : f32
    %105 = vector.broadcast %cst_51 : f32 to vector<64x32xf32>
    %106 = arith.addf %105, %104 : vector<64x32xf32>
    %cst_52 = arith.constant 1.000000e+00 : f32
    %107 = vector.broadcast %cst_52 : f32 to vector<64x32xf32>
    %108 = arith.divf %107, %106 : vector<64x32xf32>
    %cst_53 = arith.constant 1.06140542 : f32
    %109 = vector.broadcast %cst_53 : f32 to vector<64x32xf32>
    %110 = arith.mulf %109, %108 : vector<64x32xf32>
    %cst_54 = arith.constant -1.45315206 : f32
    %111 = vector.broadcast %cst_54 : f32 to vector<64x32xf32>
    %112 = arith.addf %110, %111 : vector<64x32xf32>
    %113 = arith.mulf %112, %108 : vector<64x32xf32>
    %cst_55 = arith.constant 1.42141378 : f32
    %114 = vector.broadcast %cst_55 : f32 to vector<64x32xf32>
    %115 = arith.addf %113, %114 : vector<64x32xf32>
    %116 = arith.mulf %115, %108 : vector<64x32xf32>
    %cst_56 = arith.constant -0.284496725 : f32
    %117 = vector.broadcast %cst_56 : f32 to vector<64x32xf32>
    %118 = arith.addf %116, %117 : vector<64x32xf32>
    %119 = arith.mulf %118, %108 : vector<64x32xf32>
    %cst_57 = arith.constant 0.254829586 : f32
    %120 = vector.broadcast %cst_57 : f32 to vector<64x32xf32>
    %121 = arith.addf %119, %120 : vector<64x32xf32>
    %122 = arith.mulf %121, %108 : vector<64x32xf32>
    %cst_58 = arith.constant 0.000000e+00 : f32
    %123 = vector.broadcast %cst_58 : f32 to vector<64x32xf32>
    %124 = arith.subf %123, %102 : vector<64x32xf32>
    %125 = arith.mulf %124, %102 : vector<64x32xf32>
    %126 = math.exp %125 : vector<64x32xf32>
    %127 = arith.mulf %122, %126 : vector<64x32xf32>
    %cst_59 = arith.constant 1.000000e+00 : f32
    %128 = vector.broadcast %cst_59 : f32 to vector<64x32xf32>
    %129 = arith.subf %128, %127 : vector<64x32xf32>
    %130 = arith.mulf %101, %129 : vector<64x32xf32>
    %cst_60 = arith.constant 1.000000e+00 : f32
    %131 = vector.broadcast %cst_60 : f32 to vector<64x32xf32>
    %132 = arith.addf %131, %130 : vector<64x32xf32>
    %133 = arith.mulf %94, %132 : vector<64x32xf32>
    %134 = vector.extract_strided_slice %3 {offsets = [16, 0], sizes = [16, 32], strides = [1, 1]} : vector<32x32xf32> to vector<16x32xf32>
    %cst_61 = arith.constant dense<0.000000e+00> : vector<16x32xf32>
    %135 = tpu.matmul %35, %133, %cst_61 {dimension_numbers = #tpu.dot_dimension_numbers<[1], [0], [0], [1], [0, 0, 1, 1], [], []>} : vector<16x64xf32>, vector<64x32xf32>, vector<16x32xf32> -> vector<16x32xf32>
    %136 = vector.broadcast %37 : vector<16x1xf32> to vector<16x32xf32>
    %137 = arith.addf %135, %136 : vector<16x32xf32>
    %138 = arith.addf %134, %137 : vector<16x32xf32>
    %c16 = arith.constant 16 : index
    %c0_62 = arith.constant 0 : index
    %139 = vector.load %arg20[%c16, %c0_62] : memref<32x32xf32, #tpu.memory_space<vmem>>, vector<16x32xf32>
    tpu.vector_store %arg20[%c16, %c0_62], %138 {strides = array<i32>} : memref<32x32xf32, #tpu.memory_space<vmem>>, vector<16x32xf32>,
    %c0_63 = arith.constant 0 : index
    %c0_64 = arith.constant 0 : index
    %140 = vector.load %arg20[%c0_63, %c0_64] : memref<32x32xf32, #tpu.memory_space<vmem>>, vector<32x32xf32>
    %c0_65 = arith.constant 0 : index
    %c0_66 = arith.constant 0 : index
    %c0_67 = arith.constant 0 : index
    %141 = vector.load %arg9[%c0_65, %c0_66, %c0_67] : memref<1x1x32xf32, #tpu.memory_space<vmem>>, vector<1x1x32xf32>
    %142 = vector.shape_cast %141 : vector<1x1x32xf32> to vector<1x32xf32>
    %c0_68 = arith.constant 0 : index
    %c0_69 = arith.constant 0 : index
    %c0_70 = arith.constant 0 : index
    %143 = vector.load %arg10[%c0_68, %c0_69, %c0_70] : memref<1x1x32xf32, #tpu.memory_space<vmem>>, vector<1x1x32xf32>
    %144 = vector.shape_cast %143 : vector<1x1x32xf32> to vector<1x32xf32>
    %cst_71 = arith.constant dense<0.000000e+00> : vector<32xf32>
    %145 = vector.multi_reduction <add>, %140, %cst_71 [1] : vector<32x32xf32> to vector<32xf32>
    %146 = vector.shape_cast %145 : vector<32xf32> to vector<32x1xf32>
    %cst_72 = arith.constant 3.200000e+01 : f32
    %147 = vector.broadcast %cst_72 : f32 to vector<32x1xf32>
    %148 = arith.divf %146, %147 : vector<32x1xf32>
    %149 = arith.mulf %140, %140 : vector<32x32xf32>
    %cst_73 = arith.constant dense<0.000000e+00> : vector<32xf32>
    %150 = vector.multi_reduction <add>, %149, %cst_73 [1] : vector<32x32xf32> to vector<32xf32>
    %151 = vector.shape_cast %150 : vector<32xf32> to vector<32x1xf32>
    %cst_74 = arith.constant 3.200000e+01 : f32
    %152 = vector.broadcast %cst_74 : f32 to vector<32x1xf32>
    %153 = arith.divf %151, %152 : vector<32x1xf32>
    %154 = vector.broadcast %148 : vector<32x1xf32> to vector<32x32xf32>
    %155 = arith.subf %140, %154 : vector<32x32xf32>
    %156 = arith.mulf %148, %148 : vector<32x1xf32>
    %157 = arith.subf %153, %156 : vector<32x1xf32>
    %cst_75 = arith.constant 9.99999974E-6 : f32
    %158 = vector.broadcast %cst_75 : f32 to vector<32x1xf32>
    %159 = arith.addf %157, %158 : vector<32x1xf32>
    %160 = math.rsqrt %159 : vector<32x1xf32>
    %161 = vector.broadcast %160 : vector<32x1xf32> to vector<32x32xf32>
    %162 = arith.mulf %155, %161 : vector<32x32xf32>
    %163 = vector.broadcast %142 : vector<1x32xf32> to vector<32x32xf32>
    %164 = arith.mulf %162, %163 : vector<32x32xf32>
    %165 = vector.broadcast %144 : vector<1x32xf32> to vector<32x32xf32>
    %166 = arith.addf %164, %165 : vector<32x32xf32>
    %c0_76 = arith.constant 0 : index
    %c0_77 = arith.constant 0 : index
    %c0_78 = arith.constant 0 : index
    %167 = vector.load %arg11[%c0_76, %c0_77, %c0_78] : memref<1x32x64xf32, #tpu.memory_space<vmem>>, vector<1x32x64xf32>
    %168 = vector.shape_cast %167 : vector<1x32x64xf32> to vector<32x64xf32>
    %cst_79 = arith.constant dense<0.000000e+00> : vector<32x64xf32>
    %169 = tpu.matmul %166, %168, %cst_79 {dimension_numbers = #tpu.dot_dimension_numbers<[1], [0], [0], [1], [0, 0, 1, 1], [], []>} : vector<32x32xf32>, vector<32x64xf32>, vector<32x64xf32> -> vector<32x64xf32>
    %c0_80 = arith.constant 0 : index
    %c0_81 = arith.constant 0 : index
    %c0_82 = arith.constant 0 : index
    %170 = vector.load %arg12[%c0_80, %c0_81, %c0_82] : memref<1x1x64xf32, #tpu.memory_space<vmem>>, vector<1x1x64xf32>
    %171 = vector.shape_cast %170 : vector<1x1x64xf32> to vector<1x64xf32>
    %172 = vector.broadcast %171 : vector<1x64xf32> to vector<32x64xf32>
    %173 = arith.addf %169, %172 : vector<32x64xf32>
    %cst_83 = arith.constant 5.000000e-01 : f32
    %174 = vector.broadcast %cst_83 : f32 to vector<32x64xf32>
    %175 = arith.mulf %174, %173 : vector<32x64xf32>
    %cst_84 = arith.constant 0.707106769 : f32
    %176 = vector.broadcast %cst_84 : f32 to vector<32x64xf32>
    %177 = arith.mulf %173, %176 : vector<32x64xf32>
    %cst_85 = arith.constant 0.000000e+00 : f32
    %178 = vector.broadcast %cst_85 : f32 to vector<32x64xf32>
    %179 = arith.cmpf oge, %177, %178 : vector<32x64xf32>
    %cst_86 = arith.constant 1.000000e+00 : f32
    %cst_87 = arith.constant -1.000000e+00 : f32
    %180 = vector.broadcast %cst_86 : f32 to vector<32x64xf32>
    %181 = vector.broadcast %cst_87 : f32 to vector<32x64xf32>
    %182 = arith.select %179, %180, %181 : vector<32x64xi1>, vector<32x64xf32>
    %183 = math.absf %177 : vector<32x64xf32>
    %cst_88 = arith.constant 0.327591091 : f32
    %184 = vector.broadcast %cst_88 : f32 to vector<32x64xf32>
    %185 = arith.mulf %184, %183 : vector<32x64xf32>
    %cst_89 = arith.constant 1.000000e+00 : f32
    %186 = vector.broadcast %cst_89 : f32 to vector<32x64xf32>
    %187 = arith.addf %186, %185 : vector<32x64xf32>
    %cst_90 = arith.constant 1.000000e+00 : f32
    %188 = vector.broadcast %cst_90 : f32 to vector<32x64xf32>
    %189 = arith.divf %188, %187 : vector<32x64xf32>
    %cst_91 = arith.constant 1.06140542 : f32
    %190 = vector.broadcast %cst_91 : f32 to vector<32x64xf32>
    %191 = arith.mulf %190, %189 : vector<32x64xf32>
    %cst_92 = arith.constant -1.45315206 : f32
    %192 = vector.broadcast %cst_92 : f32 to vector<32x64xf32>
    %193 = arith.addf %191, %192 : vector<32x64xf32>
    %194 = arith.mulf %193, %189 : vector<32x64xf32>
    %cst_93 = arith.constant 1.42141378 : f32
    %195 = vector.broadcast %cst_93 : f32 to vector<32x64xf32>
    %196 = arith.addf %194, %195 : vector<32x64xf32>
    %197 = arith.mulf %196, %189 : vector<32x64xf32>
    %cst_94 = arith.constant -0.284496725 : f32
    %198 = vector.broadcast %cst_94 : f32 to vector<32x64xf32>
    %199 = arith.addf %197, %198 : vector<32x64xf32>
    %200 = arith.mulf %199, %189 : vector<32x64xf32>
    %cst_95 = arith.constant 0.254829586 : f32
    %201 = vector.broadcast %cst_95 : f32 to vector<32x64xf32>
    %202 = arith.addf %200, %201 : vector<32x64xf32>
    %203 = arith.mulf %202, %189 : vector<32x64xf32>
    %cst_96 = arith.constant 0.000000e+00 : f32
    %204 = vector.broadcast %cst_96 : f32 to vector<32x64xf32>
    %205 = arith.subf %204, %183 : vector<32x64xf32>
    %206 = arith.mulf %205, %183 : vector<32x64xf32>
    %207 = math.exp %206 : vector<32x64xf32>
    %208 = arith.mulf %203, %207 : vector<32x64xf32>
    %cst_97 = arith.constant 1.000000e+00 : f32
    %209 = vector.broadcast %cst_97 : f32 to vector<32x64xf32>
    %210 = arith.subf %209, %208 : vector<32x64xf32>
    %211 = arith.mulf %182, %210 : vector<32x64xf32>
    %cst_98 = arith.constant 1.000000e+00 : f32
    %212 = vector.broadcast %cst_98 : f32 to vector<32x64xf32>
    %213 = arith.addf %212, %211 : vector<32x64xf32>
    %214 = arith.mulf %175, %213 : vector<32x64xf32>
    %c0_99 = arith.constant 0 : index
    %c0_100 = arith.constant 0 : index
    %c0_101 = arith.constant 0 : index
    %215 = vector.load %arg13[%c0_99, %c0_100, %c0_101] : memref<1x64x32xf32, #tpu.memory_space<vmem>>, vector<1x64x32xf32>
    %216 = vector.shape_cast %215 : vector<1x64x32xf32> to vector<64x32xf32>
    %cst_102 = arith.constant dense<0.000000e+00> : vector<32x32xf32>
    %217 = tpu.matmul %214, %216, %cst_102 {dimension_numbers = #tpu.dot_dimension_numbers<[1], [0], [0], [1], [0, 0, 1, 1], [], []>} : vector<32x64xf32>, vector<64x32xf32>, vector<32x32xf32> -> vector<32x32xf32>
    %c0_103 = arith.constant 0 : index
    %c0_104 = arith.constant 0 : index
    %c0_105 = arith.constant 0 : index
    %218 = vector.load %arg14[%c0_103, %c0_104, %c0_105] : memref<1x1x32xf32, #tpu.memory_space<vmem>>, vector<1x1x32xf32>
    %219 = vector.shape_cast %218 : vector<1x1x32xf32> to vector<1x32xf32>
    %220 = vector.broadcast %219 : vector<1x32xf32> to vector<32x32xf32>
    %221 = arith.addf %217, %220 : vector<32x32xf32>
    %222 = arith.addf %140, %221 : vector<32x32xf32>
    %c0_106 = arith.constant 0 : index
    %c0_107 = arith.constant 0 : index
    %223 = vector.load %arg20[%c0_106, %c0_107] : memref<32x32xf32, #tpu.memory_space<vmem>>, vector<32x32xf32>
    tpu.vector_store %arg20[%c0_106, %c0_107], %222 {strides = array<i32>} : memref<32x32xf32, #tpu.memory_space<vmem>>, vector<32x32xf32>,
    %c1_i32 = arith.constant 1 : i32
    %224 = arith.cmpi eq, %arg1, %c1_i32 : i32
    %225 = arith.extui %224 : i1 to i32
    %c0_i32_108 = arith.constant 0 : i32
    %226 = arith.cmpi ne, %225, %c0_i32_108 : i32
    scf.if %226 {
      %c0_109 = arith.constant 0 : index
      %c0_110 = arith.constant 0 : index
      %227 = vector.load %arg15[%c0_109, %c0_110] : memref<1x32xf32, #tpu.memory_space<vmem>>, vector<1x32xf32>
      %c0_111 = arith.constant 0 : index
      %c0_112 = arith.constant 0 : index
      %228 = vector.load %arg16[%c0_111, %c0_112] : memref<1x32xf32, #tpu.memory_space<vmem>>, vector<1x32xf32>
      %cst_113 = arith.constant dense<0.000000e+00> : vector<32xf32>
      %229 = vector.multi_reduction <add>, %222, %cst_113 [1] : vector<32x32xf32> to vector<32xf32>
      %230 = vector.shape_cast %229 : vector<32xf32> to vector<32x1xf32>
      %cst_114 = arith.constant 3.200000e+01 : f32
      %231 = vector.broadcast %cst_114 : f32 to vector<32x1xf32>
      %232 = arith.divf %230, %231 : vector<32x1xf32>
      %233 = arith.mulf %222, %222 : vector<32x32xf32>
      %cst_115 = arith.constant dense<0.000000e+00> : vector<32xf32>
      %234 = vector.multi_reduction <add>, %233, %cst_115 [1] : vector<32x32xf32> to vector<32xf32>
      %235 = vector.shape_cast %234 : vector<32xf32> to vector<32x1xf32>
      %cst_116 = arith.constant 3.200000e+01 : f32
      %236 = vector.broadcast %cst_116 : f32 to vector<32x1xf32>
      %237 = arith.divf %235, %236 : vector<32x1xf32>
      %238 = vector.broadcast %232 : vector<32x1xf32> to vector<32x32xf32>
      %239 = arith.subf %222, %238 : vector<32x32xf32>
      %240 = arith.mulf %232, %232 : vector<32x1xf32>
      %241 = arith.subf %237, %240 : vector<32x1xf32>
      %cst_117 = arith.constant 9.99999974E-6 : f32
      %242 = vector.broadcast %cst_117 : f32 to vector<32x1xf32>
      %243 = arith.addf %241, %242 : vector<32x1xf32>
      %244 = math.rsqrt %243 : vector<32x1xf32>
      %245 = vector.broadcast %244 : vector<32x1xf32> to vector<32x32xf32>
      %246 = arith.mulf %239, %245 : vector<32x32xf32>
      %247 = vector.broadcast %227 : vector<1x32xf32> to vector<32x32xf32>
      %248 = arith.mulf %246, %247 : vector<32x32xf32>
      %249 = vector.broadcast %228 : vector<1x32xf32> to vector<32x32xf32>
      %250 = arith.addf %248, %249 : vector<32x32xf32>
      %251 = vector.extract_strided_slice %250 {offsets = [0, 0], sizes = [16, 32], strides = [1, 1]} : vector<32x32xf32> to vector<16x32xf32>
      %cst_118 = arith.constant dense<0.000000e+00> : vector<32xf32>
      %252 = vector.multi_reduction <add>, %251, %cst_118 [0] : vector<16x32xf32> to vector<32xf32>
      %253 = vector.shape_cast %252 : vector<32xf32> to vector<1x32xf32>
      %cst_119 = arith.constant 1.600000e+01 : f32
      %254 = vector.broadcast %cst_119 : f32 to vector<1x32xf32>
      %255 = arith.divf %253, %254 : vector<1x32xf32>
      %c0_120 = arith.constant 0 : index
      %c0_121 = arith.constant 0 : index
      %256 = vector.load %arg17[%c0_120, %c0_121] : memref<32x8xf32, #tpu.memory_space<vmem>>, vector<32x8xf32>
      %cst_122 = arith.constant dense<0.000000e+00> : vector<1x8xf32>
      %257 = tpu.matmul %255, %256, %cst_122 {dimension_numbers = #tpu.dot_dimension_numbers<[1], [0], [0], [1], [0, 0, 1, 1], [], []>} : vector<1x32xf32>, vector<32x8xf32>, vector<1x8xf32> -> vector<1x8xf32>
      %c0_123 = arith.constant 0 : index
      %c0_124 = arith.constant 0 : index
      %258 = vector.load %arg18[%c0_123, %c0_124] : memref<1x8xf32, #tpu.memory_space<vmem>>, vector<1x8xf32>
      %259 = arith.addf %257, %258 : vector<1x8xf32>
      %c0_125 = arith.constant 0 : index
      %c0_126 = arith.constant 0 : index
      %c0_127 = arith.constant 0 : index
      %260 = vector.load %arg19[%c0_125, %c0_126, %c0_127] : memref<1x2x8xf32, #tpu.memory_space<vmem>>, vector<1x1x8xf32>
      %261 = vector.shape_cast %260 : vector<1x1x8xf32> to vector<1x8xf32>
      %262 = vector.shape_cast %259 : vector<1x8xf32> to vector<1x1x8xf32>
      tpu.vector_store %arg19[%c0_125, %c0_126, %c0_127], %262 {strides = array<i32>} : memref<1x2x8xf32, #tpu.memory_space<vmem>>, vector<1x1x8xf32>,
      %263 = vector.extract_strided_slice %250 {offsets = [16, 0], sizes = [16, 32], strides = [1, 1]} : vector<32x32xf32> to vector<16x32xf32>
      %cst_128 = arith.constant dense<0.000000e+00> : vector<32xf32>
      %264 = vector.multi_reduction <add>, %263, %cst_128 [0] : vector<16x32xf32> to vector<32xf32>
      %265 = vector.shape_cast %264 : vector<32xf32> to vector<1x32xf32>
      %cst_129 = arith.constant 1.600000e+01 : f32
      %266 = vector.broadcast %cst_129 : f32 to vector<1x32xf32>
      %267 = arith.divf %265, %266 : vector<1x32xf32>
      %c0_130 = arith.constant 0 : index
      %c0_131 = arith.constant 0 : index
      %268 = vector.load %arg17[%c0_130, %c0_131] : memref<32x8xf32, #tpu.memory_space<vmem>>, vector<32x8xf32>
      %cst_132 = arith.constant dense<0.000000e+00> : vector<1x8xf32>
      %269 = tpu.matmul %267, %268, %cst_132 {dimension_numbers = #tpu.dot_dimension_numbers<[1], [0], [0], [1], [0, 0, 1, 1], [], []>} : vector<1x32xf32>, vector<32x8xf32>, vector<1x8xf32> -> vector<1x8xf32>
      %c0_133 = arith.constant 0 : index
      %c0_134 = arith.constant 0 : index
      %270 = vector.load %arg18[%c0_133, %c0_134] : memref<1x8xf32, #tpu.memory_space<vmem>>, vector<1x8xf32>
      %271 = arith.addf %269, %270 : vector<1x8xf32>
      %c0_135 = arith.constant 0 : index
      %c1 = arith.constant 1 : index
      %c0_136 = arith.constant 0 : index
      %272 = vector.load %arg19[%c0_135, %c1, %c0_136] : memref<1x2x8xf32, #tpu.memory_space<vmem>>, vector<1x1x8xf32>
      %273 = vector.shape_cast %272 : vector<1x1x8xf32> to vector<1x8xf32>
      %274 = vector.shape_cast %271 : vector<1x8xf32> to vector<1x1x8xf32>
      tpu.vector_store %arg19[%c0_135, %c1, %c0_136], %274 {strides = array<i32>} : memref<1x2x8xf32, #tpu.memory_space<vmem>>, vector<1x1x8xf32>,
    } else {
    }
    return
  }
  func.func @transform_0(%arg0: i32, %arg1: i32) -> (i32, i32, i32) {
    %c0_i32 = arith.constant 0 : i32
    %c0_i32_0 = arith.constant 0 : i32
    %c0_i32_1 = arith.constant 0 : i32
    return %arg0, %c0_i32, %c0_i32_0 : i32, i32, i32
  }
  func.func @transform_1(%arg0: i32, %arg1: i32) -> (i32, i32, i32) {
    %c0_i32 = arith.constant 0 : i32
    %c0_i32_0 = arith.constant 0 : i32
    %c0_i32_1 = arith.constant 0 : i32
    return %arg1, %c0_i32, %c0_i32_0 : i32, i32, i32
  }
  func.func @transform_2(%arg0: i32, %arg1: i32) -> (i32, i32, i32) {
    %c0_i32 = arith.constant 0 : i32
    %c0_i32_0 = arith.constant 0 : i32
    %c0_i32_1 = arith.constant 0 : i32
    return %arg1, %c0_i32, %c0_i32_0 : i32, i32, i32
  }
  func.func @transform_3(%arg0: i32, %arg1: i32) -> (i32, i32, i32) {
    %c0_i32 = arith.constant 0 : i32
    %c0_i32_0 = arith.constant 0 : i32
    %c0_i32_1 = arith.constant 0 : i32
    return %arg1, %c0_i32, %c0_i32_0 : i32, i32, i32
  }
  func.func @transform_4(%arg0: i32, %arg1: i32) -> (i32, i32, i32) {
    %c0_i32 = arith.constant 0 : i32
    %c0_i32_0 = arith.constant 0 : i32
    %c0_i32_1 = arith.constant 0 : i32
    return %arg1, %c0_i32, %c0_i32_0 : i32, i32, i32
  }
  func.func @transform_5(%arg0: i32, %arg1: i32) -> (i32, i32, i32) {
    %c0_i32 = arith.constant 0 : i32
    %c0_i32_0 = arith.constant 0 : i32
    %c0_i32_1 = arith.constant 0 : i32
    return %arg1, %c0_i32, %c0_i32_0 : i32, i32, i32
  }
  func.func @transform_6(%arg0: i32, %arg1: i32) -> (i32, i32, i32) {
    %c0_i32 = arith.constant 0 : i32
    %c0_i32_0 = arith.constant 0 : i32
    %c0_i32_1 = arith.constant 0 : i32
    return %arg1, %c0_i32, %c0_i32_0 : i32, i32, i32
  }
  func.func @transform_7(%arg0: i32, %arg1: i32) -> (i32, i32, i32) {
    %c0_i32 = arith.constant 0 : i32
    %c0_i32_0 = arith.constant 0 : i32
    %c0_i32_1 = arith.constant 0 : i32
    return %arg1, %c0_i32, %c0_i32_0 : i32, i32, i32
  }
  func.func @transform_8(%arg0: i32, %arg1: i32) -> (i32, i32, i32) {
    %c0_i32 = arith.constant 0 : i32
    %c0_i32_0 = arith.constant 0 : i32
    %c0_i32_1 = arith.constant 0 : i32
    return %arg1, %c0_i32, %c0_i32_0 : i32, i32, i32
  }
  func.func @transform_9(%arg0: i32, %arg1: i32) -> (i32, i32, i32) {
    %c0_i32 = arith.constant 0 : i32
    %c0_i32_0 = arith.constant 0 : i32
    %c0_i32_1 = arith.constant 0 : i32
    return %arg1, %c0_i32, %c0_i32_0 : i32, i32, i32
  }
  func.func @transform_10(%arg0: i32, %arg1: i32) -> (i32, i32, i32) {
    %c0_i32 = arith.constant 0 : i32
    %c0_i32_0 = arith.constant 0 : i32
    %c0_i32_1 = arith.constant 0 : i32
    return %arg1, %c0_i32, %c0_i32_0 : i32, i32, i32
  }
  func.func @transform_11(%arg0: i32, %arg1: i32) -> (i32, i32, i32) {
    %c0_i32 = arith.constant 0 : i32
    %c0_i32_0 = arith.constant 0 : i32
    %c0_i32_1 = arith.constant 0 : i32
    return %arg1, %c0_i32, %c0_i32_0 : i32, i32, i32
  }
  func.func @transform_12(%arg0: i32, %arg1: i32) -> (i32, i32, i32) {
    %c0_i32 = arith.constant 0 : i32
    %c0_i32_0 = arith.constant 0 : i32
    %c0_i32_1 = arith.constant 0 : i32
    return %arg1, %c0_i32, %c0_i32_0 : i32, i32, i32
  }
  func.func @transform_13(%arg0: i32, %arg1: i32) -> (i32, i32) {
    %c0_i32 = arith.constant 0 : i32
    %c0_i32_0 = arith.constant 0 : i32
    %c0_i32_1 = arith.constant 0 : i32
    return %c0_i32, %c0_i32_0 : i32, i32
  }
  func.func @transform_14(%arg0: i32, %arg1: i32) -> (i32, i32) {
    %c0_i32 = arith.constant 0 : i32
    %c0_i32_0 = arith.constant 0 : i32
    %c0_i32_1 = arith.constant 0 : i32
    return %c0_i32, %c0_i32_0 : i32, i32
  }
  func.func @transform_15(%arg0: i32, %arg1: i32) -> (i32, i32) {
    %c0_i32 = arith.constant 0 : i32
    %c0_i32_0 = arith.constant 0 : i32
    %c0_i32_1 = arith.constant 0 : i32
    return %c0_i32, %c0_i32_0 : i32, i32
  }
  func.func @transform_16(%arg0: i32, %arg1: i32) -> (i32, i32) {
    %c0_i32 = arith.constant 0 : i32
    %c0_i32_0 = arith.constant 0 : i32
    %c0_i32_1 = arith.constant 0 : i32
    return %c0_i32, %c0_i32_0 : i32, i32
  }
  func.func @transform_17(%arg0: i32, %arg1: i32) -> (i32, i32, i32) {
    %c0_i32 = arith.constant 0 : i32
    %c0_i32_0 = arith.constant 0 : i32
    %c0_i32_1 = arith.constant 0 : i32
    return %arg0, %c0_i32, %c0_i32_0 : i32, i32, i32
  }
}

</mosaic_0001>

<bundles_post_ra>
// kernel: mlp_mixer_forward.1
= control target key start
LH: loop header
LB: loop body
LE: loop exit
PB: predicated region body
PF: predicated region fallthrough
CT: control target
= control target key end

     0   :  { %s4055_s0 = inlined_call_operand.vmem [shape: f32[2,16,32], index: 0, kind: input, shape index: {}]   ;;  %s4056_s1 = inlined_call_operand.vmem [shape: f32[2,1,32], index: 1, kind: input, shape index: {}]   ;;  %s4057_s2 = inlined_call_operand.vmem [shape: f32[2,1,32], index: 2, kind: input, shape index: {}]   ;;  %s4058_s3 = inlined_call_operand.vmem [shape: f32[2,64,16], index: 3, kind: input, shape index: {}]   ;;  %s4059_s4 = inlined_call_operand.vmem [shape: f32[2,64,1], index: 4, kind: input, shape index: {}]   ;;  %s4060_s5 = inlined_call_operand.vmem [shape: f32[2,16,64], index: 5, kind: input, shape index: {}]   ;;  %s4061_s6 = inlined_call_operand.vmem [shape: f32[2,16,1], index: 6, kind: input, shape index: {}]   ;;  %s4062_s7 = inlined_call_operand.vmem [shape: f32[2,1,32], index: 7, kind: input, shape index: {}]   ;;  %s4063_s8 = inlined_call_operand.vmem [shape: f32[2,1,32], index: 8, kind: input, shape index: {}]   ;;  %s4064_s9 = inlined_call_operand.vmem [shape: f32[2,32,64], index: 9, kind: input, shape index: {}]   ;;  %s4065_s10 = inlined_call_operand.vmem [shape: f32[2,1,64], index: 10, kind: input, shape index: {}]   ;;  %s4066_s11 = inlined_call_operand.vmem [shape: f32[2,64,32], index: 11, kind: input, shape index: {}]   ;;  %s4067_s12 = inlined_call_operand.vmem [shape: f32[2,1,32], index: 12, kind: input, shape index: {}]   ;;  %s4068_s13 = inlined_call_operand.vmem [shape: f32[1,32], index: 13, kind: input, shape index: {}]   ;;  %s4069_s14 = inlined_call_operand.vmem [shape: f32[1,32], index: 14, kind: input, shape index: {}]   ;;  %s4070_s15 = inlined_call_operand.vmem [shape: f32[32,8], index: 15, kind: input, shape index: {}]   ;;  %s4071_s16 = inlined_call_operand.vmem [shape: f32[1,8], index: 16, kind: input, shape index: {}]   ;;  %s4072_s17 = inlined_call_operand.hbm [shape: f32[1,2,8], index: 17, kind: output, shape index: {}]  }
   0x1   :  { %4092 = sst [smem:[#allocation20_spill]] %s4055_s0 }
   0x2   :  { %4093 = sst [smem:[#allocation21_spill]] %s4056_s1 }
   0x3   :  { %4094 = sst [smem:[#allocation22_spill]] %s4058_s3 }
   0x4   :  { %4095 = sst [smem:[#allocation23_spill]] %s4059_s4 }
   0x5   :  { %4096 = sst [smem:[#allocation24_spill]] %s4060_s5 }
   0x6   :  { %4097 = sst [smem:[#allocation25_spill]] %s4068_s13 }
   0x7   :  { %4098 = sst [smem:[#allocation26_spill]] %s4069_s14 }
   0x8   :  { %4099 = sst [smem:[#allocation27_spill]] %s4070_s15 }
   0x9   :  { %4100 = sst [smem:[#allocation28_spill]] %s4071_s16 }
   0xa   :  { %4101 = sst [smem:[#allocation29_spill]] %s4072_s17 }
   0xb   :  { %22 = vsyncpa [#allocation4], 0  ;;  %s3278_s24 = smov 0   ;;  %s3280_s25 = smov 0  }
   0xc   :  { %s3282_s26 = smov 0  }
   0xd LB: > { %4102 = sst [smem:[#allocation6_spill]] %s3176_s25  ;;  %s37_s28 = sadd.s32 1, %s3176_s25  ;;  %s3180_s26 = sphi %s3282_s26, %s28_s26   ;;  %s3176_s25 = sphi %s3280_s25, %s4148_s25   ;;  %s3172_s24 = sphi %s3278_s24, %s4147_s24  }
   0xe   : > { %4103 = sst [smem:[#allocation7_spill]] %s3180_s26  ;;  %p38_p0 = scmp.ge.s32.totalorder %s37_s28, 2 }
   0xf   : > { %p2645_p1 = scmp.ge.s32.totalorder %s3180_s26, 1  ;;  %p610_p2 = scmp.lt.s32.totalorder %s3180_s26, 3 }
  0x10   : > { %s4150_s28 = smov (%p38_p0, %s37_s28), 0 }
  0x11   : > { %4104 = sst [smem:[#allocation8_spill]] %s4150_s28  ;;  %p611_p3 = pnand %p2645_p1, %p610_p2 }
  0x13   : > { %614 = sbr.rel (%p611_p3) target bundleno = 2129 (0x851), region = 88 }
  0x1a   : > { %p713_p4 = scmp.lt.s32.totalorder %s3172_s24, 1  ;;  %s4106_s3 = sld [smem:[#allocation22_spill]] }
  0x1b   : > { %s4107_s4 = sld [smem:[#allocation23_spill]]  ;;  %s4108_s5 = sld [smem:[#allocation24_spill]] }
  0x1c   : > { %s3301_s29 = scalar_select %p713_p4, %s3172_s24, 1 }
  0x1d   : > { %p2658_p5 = scmp.ne.s32.totalorder %s3172_s24, 0 }
  0x1e   : > { %s2704_s22 = sshll.u32 %s3301_s29, 6  ;;  %s2706_s23 = sshll.u32 %s3301_s29, 4  ;;  %vm767_vm0 = vcmask (!%p2658_p5), 261120  }
  0x1f   : > { %s3331_s20 = scalar_lea.vmem %s4061_s6, %s2706_s23  ;;  %s741_s27 = scalar_lea.vmem %s4062_s7, %s3301_s29 }
  0x20   : > { %s3316_s25 = scalar_lea.vmem %s4106_s3, %s2704_s22  ;;  %s744_s0 = scalar_lea.vmem %s4063_s8, %s3301_s29 }
  0x21   : > { %s3321_s17 = scalar_lea.vmem %s4107_s4, %s2704_s22  ;;  %s3326_s18 = scalar_lea.vmem %s4108_s5, %s2706_s23 }
  0x22   : > { %s2708_s30 = sshll.u32 %s3301_s29, 5  ;;  %s752_s16 = scalar_lea.vmem %s4065_s10, %s3301_s29 }
  0x23   : > { %s3349_s15 = scalar_lea.vmem %s4064_s9, %s2708_s30  ;;  %s3354_s1 = scalar_lea.vmem %s4066_s11, %s2704_s22 }
  0x24   : > { %s760_s3 = scalar_lea.vmem %s4067_s12, %s3301_s29  ;;  %764 = sbr.rel (%p2658_p5) target bundleno = 46 (0x2e), region = 92 }
  0x25   : > { %s4109_s13 = sld [smem:[#allocation20_spill]] (!%p2658_p5) }
  0x2b   : > { %v765_v0 = vld [vmem:[%s4109_s13] sm:$0xff]  ;;  %v766_v1 = vld [vmem:[%s4109_s13 + $0x8] sm:$0xff]  ;;  %v2659_v2 = vld [vmem:[%s4109_s13 + $0x10] sm:$0xff] }
  0x2c   : > { %768 = vst.msk [vmem:[#allocation2] sm:$0xff] %vm767_vm0, %v765_v0  ;;  %769 = vst.msk [vmem:[#allocation2 + $0x8] sm:$0xff] %vm767_vm0, %v766_v1  ;;  %v2660_v3 = vld [vmem:[%s4109_s13 + $0x18] sm:$0xff] }
  0x2d   : > { %773 = vst.msk [vmem:[#allocation2 + $0x10] sm:$0xff] %vm767_vm0, %v2659_v2  ;;  %774 = vst.msk [vmem:[#allocation2 + $0x18] sm:$0xff] %vm767_vm0, %v2660_v3 }
  0x2e PF: > { %vm781_vm1 = vcmask 261120   ;;  %v3182_v12 = vmov 0   ;;  %v872_v13 = vld [vmem:[%s3321_s17 + $0x8] sm:$0xff]  ;;  %v873_v14 = vld [vmem:[%s3321_s17 + $0x10] sm:$0xff]  ;;  %v874_v15 = vld [vmem:[%s3321_s17 + $0x18] sm:$0xff]  ;;  %vm923_vm2 = vcmask 130048   ;;  %s4114_s5 = scalar_lea.vmem %s4057_s2, %s3301_s29 }
  0x2f   : > { %3021 = vset.pattern.permute.xlu1 %v3182_v12  ;;  %3020 = vset.pattern.permute.xlu0 %v3182_v12  ;;  %v875_v16 = vld [vmem:[%s3321_s17 + $0x20] sm:$0xff]  ;;  %v876_v17 = vld [vmem:[%s3321_s17 + $0x28] sm:$0xff]  ;;  %v877_v18 = vld [vmem:[%s3321_s17 + $0x30] sm:$0xff]  ;;  %s4112_s14 = sld [smem:[#allocation21_spill]]  ;;  %vm1279_vm3 = vcmask 523264   ;;  %p2695_p6 = scmp.ne.s32.totalorder %s3172_s24, 1 }
  0x30   : > { %v878_v19 = vld [vmem:[%s3321_s17 + $0x38] sm:$0xff]  ;;  %v3395_v20 = vld [vmem:[%s3316_s25] sm:$0xff]  ;;  %v882_v30 = vld [vmem:[%s3331_s20 + $0x8] sm:$0xff]  ;;  %s4139_s28 = sld [smem:[#allocation25_spill]] (!%p2695_p6)  ;;  %s4141_s30 = sld [smem:[#allocation28_spill]] (!%p2695_p6) }
  0x31   : > { %2784 = vmatprep.mubr.msk.f32.mxu1 %vm923_vm2, %v3395_v20  ;;  %v871_v21 = vld [vmem:[%s3321_s17] sm:$0xff]  ;;  %v3437_v59 = vld [vmem:[%s3316_s25 + $0x8] sm:$0xff]  ;;  %v3440_v60 = vld [vmem:[%s3316_s25 + $0x10] sm:$0xff] }
  0x32   : > { %v881_v31 = vld [vmem:[%s3331_s20] sm:$0xff]  ;;  %v3447_v61 = vld [vmem:[%s3316_s25 + $0x18] sm:$0xff]  ;;  %v3457_v63 = vld [vmem:[%s3316_s25 + $0x28] sm:$0xff] }
  0x33   : > { %v3373_v4 = vld [vmem:[#allocation2] sm:$0xff]  ;;  %v3375_v5 = vld [vmem:[#allocation2 + $0x8] sm:$0xff]  ;;  %v3460_v0 = vld [vmem:[%s3316_s25 + $0x30] sm:$0xff] }
  0x34   : > { %4110 = vst [vmem:[#allocation9_spill] sm:$0xff] %v3373_v4  ;;  %4111 = vst [vmem:[#allocation10_spill] sm:$0xff] %v3375_v5  ;;  %v782_v6 = vsel %vm781_vm1, %v3373_v4, 0.0  ;;  %v799_v7 = vmul.f32 %v3373_v4, %v3373_v4  ;;  %v800_v8 = vmul.f32 %v3375_v5, %v3375_v5  ;;  %v785_v10 = vsel %vm781_vm1, %v3375_v5, 0.0  ;;  %v3400_v22 = vld [vmem:[#allocation2 + $0x10] sm:$0xff]  ;;  %v3402_v23 = vld [vmem:[#allocation2 + $0x18] sm:$0xff] }
  0x35   : > { %783 = vadd.xlane.f32.xlu0 %v782_v6  ;;  %v788_v24 = vsel %vm781_vm1, %v3400_v22, 0.0  ;;  %v802_v25 = vmul.f32 %v3402_v23, %v3402_v23  ;;  %v791_v27 = vsel %vm781_vm1, %v3402_v23, 0.0  ;;  %v801_v28 = vmul.f32 %v3400_v22, %v3400_v22  ;;  %s4113_s21 = scalar_lea.vmem %s4112_s14, %s3301_s29  ;;  %v3431_v54 = vld [vmem:[%s4114_s5] ss:$0 sm:$0xff]  ;;  %v3467_v1 = vld [vmem:[%s3316_s25 + $0x38] sm:$0xff] }
  0x36   : > { %v803_v9 = vsel %vm781_vm1, %v799_v7, 0.0  ;;  %v806_v11 = vsel %vm781_vm1, %v800_v8, 0.0  ;;  %v3422_v49 = vld [vmem:[%s4113_s21] ss:$0 sm:$0xff]  ;;  %4115 = vst [vmem:[#allocation11_spill] sm:$0xff] %v3467_v1 }
  0x37   : > { %804 = vadd.xlane.f32.xlu1 %v803_v9  ;;  %v812_v26 = vsel %vm781_vm1, %v802_v25, 0.0  ;;  %v809_v29 = vsel %vm781_vm1, %v801_v28, 0.0  ;;  %v3450_v62 = vld [vmem:[%s3316_s25 + $0x20] sm:$0xff] }
  0x38   : > { %v879_v2 = vld [vmem:[%s3326_s18] sm:$0xff] }
  0x39   : > { %786 = vadd.xlane.f32.xlu0 %v785_v10  ;;  %2812 = vmatprep.mubr.msk.f32.mxu0 %vm1279_vm3, %v879_v2 }
  0x3b   : > { %807 = vadd.xlane.f32.xlu1 %v806_v11 }
  0x4c   : > { %890 = vperm.xlu1 %3021, %v872_v13  }
  0x4f   : > { %885 = vperm.xlu0 %3020, %v871_v21  }
  0x50   : > { %895 = vperm.xlu1 %3021, %v873_v14  }
  0x54   : > { %900 = vperm.xlu1 %3021, %v874_v15  }
  0x58   : > { %905 = vperm.xlu1 %3021, %v875_v16  }
  0x5c   : > { %910 = vperm.xlu1 %3021, %v876_v17  }
  0x60   : > { %915 = vperm.xlu1 %3021, %v877_v18  }
  0x64   : > { %920 = vperm.xlu1 %3021, %v878_v19  }
  0x6e   : > { %792 = vadd.xlane.f32.xlu0 %v791_v27 }
  0x72   : > { %810 = vadd.xlane.f32.xlu0 %v809_v29 }
  0x88   : > { %789 = vadd.xlane.f32.xlu1 %v788_v24  ;;  %1271 = vperm.xlu0 %3020, %v881_v31  }
  0x8c   : > { %813 = vadd.xlane.f32.xlu1 %v812_v26 }
  0x9d   : > { %1276 = vperm.xlu1 %3021, %v882_v30  }
  0xc2   : > { %v784_v32 = vpop.xlane.xlu0 %783 }
  0xc3   : > { %v795_v33 = vmul.f32 0.03125, %v784_v32 }
  0xc4   : > { %v805_v34 = vpop.xlane.xlu1 %804 }
  0xc5   : > { %v823_v35 = vmul.f32 %v795_v33, %v795_v33  ;;  %v815_v36 = vmul.f32 0.03125, %v805_v34  ;;  %v819_v46 = vsub.f32 %v3373_v4, %v795_v33 }
  0xc6   : > { %v787_v37 = vpop.xlane.xlu0 %786 }
  0xc7   : > { %v827_v38 = vsub.f32 %v815_v36, %v823_v35  ;;  %v796_v39 = vmul.f32 0.03125, %v787_v37 }
  0xc8   : > { %v808_v40 = vpop.xlane.xlu1 %807 }
  0xc9   : > { %v831_v41 = vadd.f32 1e-05, %v827_v38  ;;  %v824_v42 = vmul.f32 %v796_v39, %v796_v39  ;;  %v816_v43 = vmul.f32 0.03125, %v808_v40  ;;  %v820_v50 = vsub.f32 %v3375_v5, %v796_v39 }
  0xcb   : > { %3022 = vrsqrt.f32 %v831_v41  ;;  %v828_v44 = vsub.f32 %v816_v43, %v824_v42 }
  0xcc   : > { %v3474_v3 = vpop.permute.xlu1 %890 }
  0xcd   : > { %v832_v45 = vadd.f32 1e-05, %v828_v44  ;;  %4116 = vst [vmem:[#allocation12_spill] sm:$0xff] %v3474_v3 }
  0xce   : > { %v3488_v12 = vpop.permute.xlu0 %885 }
  0xcf   : > { %3024 = vrsqrt.f32 %v832_v45  ;;  %4123 = vst [vmem:[#allocation19_spill] sm:$0xff] %v3488_v12 }
  0xd0   : > { %v3476_v6 = vpop.permute.xlu1 %895 }
  0xd1   : > { %4117 = vst [vmem:[#allocation13_spill] sm:$0xff] %v3476_v6 }
  0xd4   : > { %v3478_v7 = vpop.permute.xlu1 %900 }
  0xd5   : > { %v3023_v47 = vpop.eup %3022  ;;  %4118 = vst [vmem:[#allocation14_spill] sm:$0xff] %v3478_v7 }
  0xd6   : > { %v839_v48 = vmul.f32 %v3023_v47, %v819_v46 }
  0xd8   : > { %v849_v53 = vmul.f32 %v3422_v49, %v839_v48  ;;  %v3480_v8 = vpop.permute.xlu1 %905 }
  0xd9   : > { %v3025_v51 = vpop.eup %3024  ;;  %4119 = vst [vmem:[#allocation15_spill] sm:$0xff] %v3480_v8 }
  0xda   : > { %v840_v52 = vmul.f32 %v3025_v51, %v820_v50  ;;  %v859_v56 = vadd.f32 %v3431_v54, %v849_v53 }
  0xdc   : > { %v850_v55 = vmul.f32 %v3422_v49, %v840_v52  ;;  %v3482_v9 = vpop.permute.xlu1 %910 }
  0xdd   : > { %4120 = vst [vmem:[#allocation16_spill] sm:$0xff] %v3482_v9 }
  0xde   : > { %v860_v57 = vadd.f32 %v3431_v54, %v850_v55 }
  0xe0   : > { %v2908_v58 = vpack.c.bf16 %v860_v57, %v859_v56  ;;  %v3484_v10 = vpop.permute.xlu1 %915 }
  0xe1   : > { %4121 = vst [vmem:[#allocation17_spill] sm:$0xff] %v3484_v10 }
  0xe2   : > { %2909 = vmatprep.subr.bf16.mxu1 %v2908_v58 }
  0xe3   : > { %2911 = vmatpush3.bf16.msra.mxu1 %v2908_v58 }
  0xe4   : > { %v3486_v11 = vpop.permute.xlu1 %920 }
  0xe5   : > { %4122 = vst [vmem:[#allocation18_spill] sm:$0xff] %v3486_v11 }
  0xe6   : > { %2785 = vmatmul.mubr.msk.f32.vlgmr.msra.gmra.mrb[0].mxu1 %vm923_vm2, %v3437_v59 }
  0xe7   : > { %2787 = vmatprep.mubr.msk.f32.mxu1 %vm923_vm2, %v3440_v60 }
  0xea   : > { %2788 = vmatmul.mubr.msk.f32.gmra.mrb[2].mxu1 %vm923_vm2, %v3447_v61 }
  0xeb   : > { %2790 = vmatprep.mubr.msk.f32.mxu1 %vm923_vm2, %v3450_v62 }
  0xee   : > { %2791 = vmatmul.mubr.msk.f32.gmra.mrb[4].mxu1 %vm923_vm2, %v3457_v63 }
  0xef   : > { %2793 = vmatprep.mubr.msk.f32.mxu1 %vm923_vm2, %v3460_v0 }
  0xf2   : > { %2794 = vmatmul.mubr.msk.f32.gmra.mrb[6].mxu1 %vm923_vm2, %v3467_v1 }
  0xf3   : > { %2847 = vmatprep.mubr.msk.f32.mxu1 %vm1279_vm3, %v879_v2 }
  0xfb   : > { %v793_v14 = vpop.xlane.xlu0 %792 }
  0xfc   : > { %v3490_v15 = vmul.f32 0.03125, %v793_v14 }
  0xfe   : > { %v826_v19 = vmul.f32 %v3490_v15, %v3490_v15 }
  0xff   : > { %v811_v21 = vpop.xlane.xlu0 %810 }
 0x100   : > { %v817_v26 = vmul.f32 0.03125, %v811_v21 }
 0x115   : > { %v790_v13 = vpop.xlane.xlu1 %789 }
 0x116   : > { %v3492_v16 = vmul.f32 0.03125, %v790_v13 }
 0x118   : > { %v825_v25 = vmul.f32 %v3492_v16, %v3492_v16 }
 0x119   : > { %v814_v17 = vpop.xlane.xlu1 %813 }
 0x11a   : > { %v818_v18 = vmul.f32 0.03125, %v814_v17  ;;  %v829_v34 = vsub.f32 %v817_v26, %v825_v25 }
 0x11c   : > { %v830_v31 = vsub.f32 %v818_v18, %v826_v19  ;;  %v833_v44 = vadd.f32 1e-05, %v829_v34 }
 0x11e   : > { %v834_v41 = vadd.f32 1e-05, %v830_v31 }
 0x120   : > { %3026 = vrsqrt.f32 %v834_v41 }
 0x121   : > { %3028 = vrsqrt.f32 %v833_v44 }
 0x1b9   : > { %v2786_v24 = vpop.f32.mrb[0].mxu1 }
 0x1ba   : > { %v1020_v27 = vadd.f32 %v2786_v24, %v3474_v3  ;;  %v1014_v28 = vpop.f32.mrb[1].mxu1 }
 0x1bb   : > { %v1015_v29 = vadd.f32 %v1014_v28, %v3488_v12 }
 0x1bc   : > { %v1062_v30 = vmul.f32 0.70710677, %v1020_v27  ;;  %v3525_v31 = vmul.f32 0.5, %v1020_v27 }
 0x1bd   : > { %v1061_v32 = vmul.f32 0.70710677, %v1015_v29  ;;  %v2789_v33 = vpop.f32.mrb[2].mxu1 }
 0x1be   : > { %v1086_v35 = vand.u32 2147483647, %v1062_v30  ;;  %v1030_v36 = vadd.f32 %v2789_v33, %v3478_v7  ;;  %v1024_v37 = vpop.f32.mrb[3].mxu1  ;;  %vm1070_vm4 = vcmp.ge.f32.partialorder %v1062_v30, 0.0  ;;  %v3527_v33 = vmul.f32 0.5, %v1015_v29 }
 0x1bf   : > { %v1085_v38 = vand.u32 2147483647, %v1061_v32  ;;  %v3502_v39 = vadd.f32 %v1024_v37, %v3476_v6  ;;  %vm1069_vm5 = vcmp.ge.f32.partialorder %v1061_v32, 0.0 }
 0x1c0   : > { %v1094_v40 = vmul.f32 0.3275911, %v1086_v35  ;;  %v1064_v43 = vmul.f32 0.70710677, %v1030_v36  ;;  %v1198_v56 = vsub.f32 0.0, %v1086_v35 }
 0x1c1   : > { %v1093_v42 = vmul.f32 0.3275911, %v1085_v38  ;;  %v3505_v45 = vmul.f32 0.70710677, %v3502_v39  ;;  %v2792_v46 = vpop.f32.mrb[4].mxu1  ;;  %v1197_v18 = vsub.f32 0.0, %v1085_v38 }
 0x1c2   : > { %v1102_v47 = vadd.f32 1.0, %v1094_v40  ;;  %v1088_v48 = vand.u32 2147483647, %v1064_v43  ;;  %v1034_v50 = vpop.f32.mrb[5].mxu1  ;;  %v3511_v58 = vadd.f32 %v2792_v46, %v3482_v9  ;;  %v1206_v25 = vmul.f32 %v1198_v56, %v1086_v35 }
 0x1c3   : > { %v1101_v51 = vadd.f32 1.0, %v1093_v42  ;;  %v1087_v57 = vand.u32 2147483647, %v3505_v45  ;;  %v3516_v17 = vadd.f32 %v1034_v50, %v3480_v8  ;;  %v4082_v40 = vmov -1.0   ;;  %v3542_v50 = vpop.eup %3026 }
 0x1c4   : > { %v1096_v53 = vmul.f32 0.3275911, %v1088_v48  ;;  %3030 = vrcp.f32 %v1102_v47  ;;  %v3519_v21 = vmul.f32 0.70710677, %v3511_v58  ;;  %v1200_v34 = vsub.f32 0.0, %v1088_v48 }
 0x1c5   : > { %v2795_v55 = vpop.f32.mrb[6].mxu1  ;;  %3032 = vrcp.f32 %v1101_v51  ;;  %v1095_v19 = vmul.f32 0.3275911, %v1087_v57  ;;  %v3522_v24 = vmul.f32 0.70710677, %v3516_v17  ;;  %v3531_v41 = vsel %vm1070_vm4, 1.0, %v4082_v40 }
 0x1c6   : > { %v1044_v2 = vpop.f32.mrb[7].mxu1  ;;  %v1104_v14 = vadd.f32 1.0, %v1096_v53  ;;  %v1090_v28 = vand.u32 2147483647, %v3519_v21  ;;  %v1205_v30 = vmul.f32 %v1197_v18, %v1085_v38  ;;  %v3534_v35 = vsel %vm1069_vm5, 1.0, %v4082_v40 }
 0x1c7   : > { %v1103_v26 = vadd.f32 1.0, %v1095_v19  ;;  %v1089_v37 = vand.u32 2147483647, %v3522_v24  ;;  %vm1072_vm6 = vcmp.ge.f32.partialorder %v1064_v43, 0.0  ;;  %v3537_v27 = vadd.f32 %v2795_v55, %v3486_v11 }
 0x1c8   : > { %3034 = vrcp.f32 %v1104_v14  ;;  %v1098_v42 = vmul.f32 0.3275911, %v1090_v28  ;;  %v1215_v29 = vmul.f32 1.442695, %v1206_v25  ;;  %v1199_v44 = vsub.f32 0.0, %v1087_v57  ;;  %v3549_v14 = vpop.eup %3028 }
 0x1c9   : > { %3036 = vrcp.f32 %v1103_v26  ;;  %v1097_v32 = vmul.f32 0.3275911, %v1089_v37  ;;  %v3540_v47 = vadd.f32 %v1044_v2, %v3484_v10  ;;  %v3544_v51 = vmul.f32 0.5, %v1030_v36 }
 0x1ca   : > { %v1106_v46 = vadd.f32 1.0, %v1098_v42  ;;  %v1208_v38 = vmul.f32 %v1200_v34, %v1088_v48  ;;  %v3547_v56 = vmul.f32 0.70710677, %v3537_v27  ;;  %v1213_v18 = vmul.f32 1.442695, %v1205_v30 }
 0x1cb   : > { %v1105_v53 = vadd.f32 1.0, %v1097_v32  ;;  %vm1071_vm7 = vcmp.ge.f32.partialorder %v3505_v45, 0.0  ;;  %v3553_v55 = vmul.f32 0.70710677, %v3540_v47  ;;  %v3559_v36 = vsel %vm1072_vm6, 1.0, %v4082_v40 }
 0x1cc   : > { %3038 = vrcp.f32 %v1106_v46  ;;  %v3562_v48 = vmul.f32 0.5, %v3502_v39  ;;  %v1092_v19 = vand.u32 2147483647, %v3547_v56  ;;  %v1207_v45 = vmul.f32 %v1199_v44, %v1087_v57 }
 0x1cd   : > { %3040 = vrcp.f32 %v1105_v53  ;;  %v1202_v26 = vsub.f32 0.0, %v1090_v28  ;;  %v1091_v34 = vand.u32 2147483647, %v3553_v55  ;;  %v1219_v42 = vmul.f32 1.442695, %v1208_v38 }
 0x1ce   : > { %v3555_v2 = vpop.eup %3030  ;;  %3042 = vpow2.f32 %v1215_v29  ;;  %v3571_v43 = vsel %vm1071_vm7, 1.0, %v4082_v40  ;;  %v1201_v32 = vsub.f32 0.0, %v1089_v37  ;;  %v1100_v46 = vmul.f32 0.3275911, %v1092_v19 }
 0x1cf   : > { %v3565_v25 = vpop.eup %3032  ;;  %3044 = vpow2.f32 %v1213_v18  ;;  %v1204_v53 = vsub.f32 0.0, %v1092_v19  ;;  %v1099_v52 = vmul.f32 0.3275911, %v1091_v34  ;;  %v1203_v10 = vsub.f32 0.0, %v1091_v34 }
 0x1d0   : > { %v1108_v13 = vadd.f32 1.0, %v1100_v46  ;;  %v1125_v57 = vmul.f32 1.0614054, %v3565_v25  ;;  %v1126_v29 = vmul.f32 1.0614054, %v3555_v2  ;;  %v1210_v8 = vmul.f32 %v1202_v26, %v1090_v28 }
 0x1d1   : > { %v1217_v38 = vmul.f32 1.442695, %v1207_v45  ;;  %v1107_v40 = vadd.f32 1.0, %v1099_v52  ;;  %v1209_v6 = vmul.f32 %v1201_v32, %v1089_v37  ;;  %v1212_v12 = vmul.f32 %v1204_v53, %v1092_v19 }
 0x1d2   : > { %v3568_v30 = vpop.eup %3034  ;;  %3046 = vrcp.f32 %v1108_v13  ;;  %v1133_v18 = vadd.f32 -1.4531521, %v1125_v57  ;;  %v1134_v46 = vadd.f32 -1.4531521, %v1126_v29  ;;  %v1211_v4 = vmul.f32 %v1203_v10, %v1091_v34 }
 0x1d3   : > { %v1128_v39 = vmul.f32 1.0614054, %v3568_v30  ;;  %v3576_v44 = vpop.eup %3036  ;;  %3048 = vrcp.f32 %v1107_v40  ;;  %v1223_v52 = vmul.f32 1.442695, %v1210_v8  ;;  %v1221_v40 = vmul.f32 1.442695, %v1209_v6 }
 0x1d4   : > { %v1127_v9 = vmul.f32 1.0614054, %v3576_v44  ;;  %3050 = vpow2.f32 %v1219_v42  ;;  %v1141_v5 = vmul.f32 %v3565_v25, %v1133_v18  ;;  %v1142_v28 = vmul.f32 %v3555_v2, %v1134_v46 }
 0x1d5   : > { %v1136_v11 = vadd.f32 -1.4531521, %v1128_v39  ;;  %3052 = vpow2.f32 %v1217_v38  ;;  %v1227_v34 = vmul.f32 1.442695, %v1212_v12  ;;  %v1225_v8 = vmul.f32 1.442695, %v1211_v4 }
 0x1d6   : > { %v1135_v3 = vadd.f32 -1.4531521, %v1127_v9  ;;  %v3581_v1 = vpop.eup %3038  ;;  %v1149_v19 = vadd.f32 1.4214138, %v1141_v5  ;;  %v1150_v42 = vadd.f32 1.4214138, %v1142_v28  ;;  %3054 = vpow2.f32 %v1223_v52 }
 0x1d7   : > { %v1144_v7 = vmul.f32 %v3568_v30, %v1136_v11  ;;  %v3584_v37 = vpop.eup %3040  ;;  %v1130_v11 = vmul.f32 1.0614054, %v3581_v1  ;;  %3056 = vpow2.f32 %v1221_v40  ;;  %vm1074_vm8 = vcmp.ge.f32.partialorder %v3519_v21, 0.0 }
 0x1d8   : > { %v1143_v13 = vmul.f32 %v3576_v44, %v1135_v3  ;;  %v3043_v26 = vpop.eup %3042  ;;  %v1129_v10 = vmul.f32 1.0614054, %v3584_v37  ;;  %v1157_v39 = vmul.f32 %v3565_v25, %v1149_v19  ;;  %v1158_v29 = vmul.f32 %v3555_v2, %v1150_v42 }
 0x1d9   : > { %v1152_v45 = vadd.f32 1.4214138, %v1144_v7  ;;  %v1138_v32 = vadd.f32 -1.4531521, %v1130_v11  ;;  %v3045_v53 = vpop.eup %3044  ;;  %3058 = vpow2.f32 %v1227_v34  ;;  %vm1073_vm9 = vcmp.ge.f32.partialorder %v3522_v24, 0.0 }
 0x1da   : > { %v1151_v7 = vadd.f32 1.4214138, %v1143_v13  ;;  %v1137_v3 = vadd.f32 -1.4531521, %v1129_v10  ;;  %v1165_v38 = vadd.f32 -0.28449672, %v1157_v39  ;;  %3060 = vpow2.f32 %v1225_v8 }
 0x1db   : > { %v1160_v9 = vmul.f32 %v3568_v30, %v1152_v45  ;;  %v1146_v6 = vmul.f32 %v3581_v1, %v1138_v32  ;;  %v1166_v4 = vadd.f32 -0.28449672, %v1158_v29  ;;  %vm1076_vm10 = vcmp.ge.f32.partialorder %v3547_v56, 0.0 }
 0x1dc   : > { %v1159_v5 = vmul.f32 %v3576_v44, %v1151_v7  ;;  %v1145_v18 = vmul.f32 %v3584_v37, %v1137_v3  ;;  %v3596_v46 = vpop.eup %3046  ;;  %v1173_v52 = vmul.f32 %v3565_v25, %v1165_v38  ;;  %vm1075_vm11 = vcmp.ge.f32.partialorder %v3553_v55, 0.0 }
 0x1dd   : > { %v1168_v57 = vadd.f32 -0.28449672, %v1160_v9  ;;  %v1154_v28 = vadd.f32 1.4214138, %v1146_v6  ;;  %v3599_v13 = vpop.eup %3048  ;;  %v1132_v40 = vmul.f32 1.0614054, %v3596_v46  ;;  %v1174_v9 = vmul.f32 %v3555_v2, %v1166_v4 }
 0x1de   : > { %v1167_v45 = vadd.f32 -0.28449672, %v1159_v5  ;;  %v1153_v19 = vadd.f32 1.4214138, %v1145_v18  ;;  %v3051_v10 = vpop.eup %3050  ;;  %v1131_v7 = vmul.f32 1.0614054, %v3599_v13 }
 0x1df   : > { %v1176_v12 = vmul.f32 %v3568_v30, %v1168_v57  ;;  %v1162_v34 = vmul.f32 %v3581_v1, %v1154_v28  ;;  %v1181_v32 = vadd.f32 0.2548296, %v1173_v52  ;;  %v3053_v39 = vpop.eup %3052  ;;  %v1140_v3 = vadd.f32 -1.4531521, %v1132_v40 }
 0x1e0   : > { %v1175_v42 = vmul.f32 %v3576_v44, %v1167_v45  ;;  %v1161_v57 = vmul.f32 %v3584_v37, %v1153_v19  ;;  %v1182_v29 = vadd.f32 0.2548296, %v1174_v9  ;;  %v1139_v38 = vadd.f32 -1.4531521, %v1131_v7  ;;  %v3055_v40 = vpop.eup %3054 }
 0x1e1   : > { %v1184_v11 = vadd.f32 0.2548296, %v1176_v12  ;;  %v1170_v6 = vadd.f32 -0.28449672, %v1162_v34  ;;  %v1189_v12 = vmul.f32 %v3565_v25, %v1181_v32  ;;  %v1148_v45 = vmul.f32 %v3596_v46, %v1140_v3  ;;  %v3057_v34 = vpop.eup %3056 }
 0x1e2   : > { %v1183_v5 = vadd.f32 0.2548296, %v1175_v42  ;;  %v1169_v4 = vadd.f32 -0.28449672, %v1161_v57  ;;  %v1190_v28 = vmul.f32 %v3555_v2, %v1182_v29 }
 0x1e3   : > { %v1192_v8 = vmul.f32 %v3568_v30, %v1184_v11  ;;  %v1178_v52 = vmul.f32 %v3581_v1, %v1170_v6  ;;  %v1147_v11 = vmul.f32 %v3599_v13, %v1139_v38  ;;  %v1229_v19 = vmul.f32 %v3045_v53, %v1189_v12  ;;  %v3059_v3 = vpop.eup %3058 }
 0x1e4   : > { %v1191_v30 = vmul.f32 %v3576_v44, %v1183_v5  ;;  %v1177_v42 = vmul.f32 %v3584_v37, %v1169_v4  ;;  %v1156_v25 = vadd.f32 1.4214138, %v1148_v45  ;;  %v3061_v6 = vpop.eup %3060 }
 0x1e5   : > { %v1232_v18 = vmul.f32 %v3051_v10, %v1192_v8  ;;  %v1230_v10 = vmul.f32 %v3043_v26, %v1190_v28  ;;  %v1186_v32 = vadd.f32 0.2548296, %v1178_v52  ;;  %v1155_v8 = vadd.f32 1.4214138, %v1147_v11 }
 0x1e6   : > { %v1231_v7 = vmul.f32 %v3053_v39, %v1191_v30  ;;  %v1237_v57 = vsub.f32 1.0, %v1229_v19  ;;  %v1185_v44 = vadd.f32 0.2548296, %v1177_v42  ;;  %v1164_v29 = vmul.f32 %v3596_v46, %v1156_v25 }
 0x1e7   : > { %v1240_v9 = vsub.f32 1.0, %v1232_v18  ;;  %v1238_v5 = vsub.f32 1.0, %v1230_v10  ;;  %v1194_v38 = vmul.f32 %v3581_v1, %v1186_v32  ;;  %v1163_v12 = vmul.f32 %v3599_v13, %v1155_v8 }
 0x1e8   : > { %v1239_v53 = vsub.f32 1.0, %v1231_v7  ;;  %v1245_v26 = vmul.f32 %v1237_v57, %v3534_v35  ;;  %v1193_v39 = vmul.f32 %v3584_v37, %v1185_v44  ;;  %v1172_v4 = vadd.f32 -0.28449672, %v1164_v29 }
 0x1e9   : > { %v1248_v2 = vmul.f32 %v1240_v9, %v3559_v36  ;;  %v1246_v45 = vmul.f32 %v1238_v5, %v3531_v41  ;;  %v1234_v28 = vmul.f32 %v3055_v40, %v1194_v38  ;;  %v1171_v30 = vadd.f32 -0.28449672, %v1163_v12 }
 0x1ea   : > { %v1247_v36 = vmul.f32 %v1239_v53, %v3571_v43  ;;  %v1253_v52 = vadd.f32 1.0, %v1245_v26  ;;  %v1233_v19 = vmul.f32 %v3057_v34, %v1193_v39  ;;  %v1180_v1 = vmul.f32 %v3596_v46, %v1172_v4 }
 0x1eb   : > { %v1256_v18 = vadd.f32 1.0, %v1248_v2  ;;  %v1254_v9 = vadd.f32 1.0, %v1246_v45  ;;  %v1242_v25 = vsub.f32 1.0, %v1234_v28  ;;  %v1179_v35 = vmul.f32 %v3599_v13, %v1171_v30 }
 0x1ec   : > { %v1255_v42 = vadd.f32 1.0, %v1247_v36  ;;  %v1261_v37 = vmul.f32 %v1253_v52, %v3527_v33  ;;  %v4124_v10 = vmov -1.0   ;;  %v1241_v43 = vsub.f32 1.0, %v1233_v19  ;;  %v4129_v19 = vld [vmem:[#allocation9_spill] sm:$0xff] }
 0x1ed   : > { %v1264_v11 = vmul.f32 %v1256_v18, %v3544_v51  ;;  %v1082_v41 = vsel %vm1074_vm8, 1.0, %v4124_v10  ;;  %v1188_v40 = vadd.f32 0.2548296, %v1180_v1  ;;  %v1262_v7 = vmul.f32 %v1254_v9, %v3525_v31 }
 0x1ee   : > { %v1263_v51 = vmul.f32 %v1255_v42, %v3562_v48  ;;  %v1250_v34 = vmul.f32 %v1242_v25, %v1082_v41  ;;  %v1081_v32 = vsel %vm1073_vm9, 1.0, %v4124_v10  ;;  %v1187_v8 = vadd.f32 0.2548296, %v1179_v35  ;;  %v4131_v25 = vld [vmem:[#allocation19_spill] sm:$0xff] }
 0x1ef   : > { %v4125_v57 = vsub.f32 %v3402_v23, %v3490_v15  ;;  %v1249_v2 = vmul.f32 %v1241_v43, %v1081_v32  ;;  %v1196_v21 = vmul.f32 %v3596_v46, %v1188_v40  ;;  %v2912_v44 = vpack.c.bf16 %v1262_v7, %v1261_v37  ;;  %v4132_v7 = vld [vmem:[#allocation14_spill] sm:$0xff] }
 0x1f0   : > { %v1058_v29 = vmul.f32 0.5, %v3511_v58  ;;  %v1258_v31 = vadd.f32 1.0, %v1250_v34  ;;  %v1195_v48 = vmul.f32 %v3599_v13, %v1187_v8  ;;  %v2916_v5 = vpack.c.bf16 %v1264_v11, %v1263_v51  ;;  %v3660_v11 = vld [vmem:[%s3326_s18 + $0x8] sm:$0xff] }
 0x1f1   : > { %v842_v33 = vmul.f32 %v3542_v50, %v4125_v57  ;;  %v1057_v53 = vmul.f32 0.5, %v3516_v17  ;;  %v1257_v24 = vadd.f32 1.0, %v1249_v2  ;;  %v1236_v38 = vmul.f32 %v3059_v3, %v1196_v21  ;;  %2913 = vmatprep.subr.bf16.mxu0 %v2912_v44  ;;  %v4133_v8 = vld [vmem:[#allocation13_spill] sm:$0xff] }
 0x1f2   : > { %v1266_v23 = vmul.f32 %v1258_v31, %v1058_v29  ;;  %v1235_v15 = vmul.f32 %v3061_v6, %v1195_v48  ;;  %2915 = vmatpush3.bf16.msra.mxu0 %v2912_v44  ;;  %v4126_v50 = vsub.f32 %v3400_v22, %v3492_v16  ;;  %v1084_v17 = vsel %vm1076_vm10, 1.0, %v4124_v10 }
 0x1f3   : > { %v1265_v46 = vmul.f32 %v1257_v24, %v1057_v53  ;;  %v1244_v13 = vsub.f32 1.0, %v1236_v38  ;;  %2917 = vmatprep.subr.bf16.mxu0 %v2916_v5  ;;  %v1083_v56 = vsel %vm1075_vm11, 1.0, %v4124_v10  ;;  %v852_v18 = vmul.f32 %v3422_v49, %v842_v33 }
 0x1f4   : > { %v841_v58 = vmul.f32 %v3549_v14, %v4126_v50  ;;  %v1243_v12 = vsub.f32 1.0, %v1235_v15  ;;  %v1060_v22 = vmul.f32 0.5, %v3537_v27  ;;  %v1059_v14 = vmul.f32 0.5, %v3540_v47 }
 0x1f5   : > { %v1252_v26 = vmul.f32 %v1244_v13, %v1084_v17  ;;  %v2920_v3 = vpack.c.bf16 %v1266_v23, %v1265_v46  ;;  %v862_v28 = vadd.f32 %v3431_v54, %v852_v18  ;;  %vm2362_vm10 = vcmask (!%p2695_p6), 57344  }
 0x1f6   : > { %v1251_v55 = vmul.f32 %v1243_v12, %v1083_v56  ;;  %2919 = vmatpush3.bf16.msra.mxu0 %v2916_v5  ;;  %v851_v6 = vmul.f32 %v3422_v49, %v841_v58  ;;  %v4127_v49 = vld [vmem:[#allocation11_spill] sm:$0xff]  ;;  %v4134_v58 = vld [vmem:[#allocation16_spill] sm:$0xff] }
 0x1f7   : > { %v1260_v16 = vadd.f32 1.0, %v1252_v26  ;;  %2921 = vmatprep.subr.bf16.mxu0 %v2920_v3  ;;  %v4135_v26 = vld [vmem:[#allocation15_spill] sm:$0xff] }
 0x1f8   : > { %v1259_v39 = vadd.f32 1.0, %v1251_v55  ;;  %v861_v36 = vadd.f32 %v3431_v54, %v851_v6 }
 0x1f9   : > { %v1268_v4 = vmul.f32 %v1260_v16, %v1060_v22 }
 0x1fa   : > { %v1267_v45 = vmul.f32 %v1259_v39, %v1059_v14  ;;  %2923 = vmatpush3.bf16.msra.mxu0 %v2920_v3  ;;  %v2928_v52 = vpack.c.bf16 %v862_v28, %v861_v36 }
 0x1fc   : > { %v2924_v30 = vpack.c.bf16 %v1268_v4, %v1267_v45 }
 0x1fe   : > { %2925 = vmatprep.subr.bf16.mxu0 %v2924_v30 }
 0x1ff   : > { %2927 = vmatpush3.bf16.msra.mxu0 %v2924_v30 }
 0x200   : > { %2929 = vmatprep.subr.bf16.mxu0 %v2928_v52 }
 0x202   : > { %2813 = vmatmul.mubr.msk.f32.vlgmr.msra.gmra.mrb[0].mxu0 %vm1279_vm3, %v3660_v11 }
 0x203   : > { %2931 = vmatpush3.bf16.msra.mxu0 %v2928_v52  ;;  %2819 = vmatprep.mubr.msk.f32.mxu0 %vm923_vm2, %v3395_v20  ;;  %v3680_v20 = vpop.permute.xlu1 %1276 }
 0x206   : > { %2820 = vmatmul.mubr.msk.f32.vlgmr.msra.gmra.mrb[2].mxu0 %vm923_vm2, %v3437_v59  ;;  %v3682_v59 = vpop.permute.xlu0 %1271 }
 0x207   : > { %2822 = vmatprep.mubr.msk.f32.mxu0 %vm923_vm2, %v3440_v60 }
 0x20a   : > { %2823 = vmatmul.mubr.msk.f32.gmra.mrb[4].mxu0 %vm923_vm2, %v3447_v61 }
 0x20b   : > { %2825 = vmatprep.mubr.msk.f32.mxu0 %vm923_vm2, %v3450_v62  ;;  %v4128_v62 = vld [vmem:[#allocation10_spill] sm:$0xff] }
 0x20e   : > { %2826 = vmatmul.mubr.msk.f32.gmra.mrb[6].mxu0 %vm923_vm2, %v3457_v63 }
 0x20f   : > { %2828 = vmatprep.mubr.msk.f32.mxu0 %vm923_vm2, %v3460_v0  ;;  %v4130_v0 = vld [vmem:[#allocation12_spill] sm:$0xff] }
 0x212   : > { %2829 = vmatmul.mubr.msk.f32.gmra.mrb[8].mxu0 %vm923_vm2, %v4127_v49 }
 0x2d5   : > { %v2814_v54 = vpop.f32.mrb[0].mxu0 }
 0x2d6   : > { %v1358_v60 = vadd.f32 %v2814_v54, %v3680_v20  ;;  %v1352_v61 = vpop.f32.mrb[1].mxu0 }
 0x2d7   : > { %v1353_v27 = vadd.f32 %v1352_v61, %v3682_v59 }
 0x2d8   : > { %v1362_v47 = vadd.f32 %v1358_v60, %v4128_v62 }
 0x2d9   : > { %v1361_v63 = vadd.f32 %v1353_v27, %v4129_v19  ;;  %v2821_v1 = vpop.f32.mrb[2].mxu0 }
 0x2da   : > { %1364 = vst.msk [vmem:[#allocation2 + $0x8] sm:$0xff] %vm781_vm1, %v1362_v47  ;;  %v1437_v9 = vadd.f32 %v2821_v1, %v4130_v0  ;;  %v1431_v42 = vpop.f32.mrb[3].mxu0 }
 0x2db   : > { %1363 = vst.msk [vmem:[#allocation2] sm:$0xff] %vm781_vm1, %v1361_v63  ;;  %v1432_v35 = vadd.f32 %v1431_v42, %v4131_v25 }
 0x2dc   : > { %v1479_v37 = vmul.f32 0.70710677, %v1437_v9  ;;  %v3696_v15 = vmul.f32 0.5, %v1437_v9 }
 0x2dd   : > { %v1478_v41 = vmul.f32 0.70710677, %v1432_v35  ;;  %v2824_v43 = vpop.f32.mrb[4].mxu0  ;;  %v3702_v17 = vmul.f32 0.5, %v1432_v35 }
 0x2de   : > { %v1503_v40 = vand.u32 2147483647, %v1479_v37  ;;  %v1447_v51 = vadd.f32 %v2824_v43, %v4132_v7  ;;  %v1441_v34 = vpop.f32.mrb[5].mxu0  ;;  %vm1487_vm12 = vcmp.ge.f32.partialorder %v1479_v37, 0.0 }
 0x2df   : > { %v1502_v32 = vand.u32 2147483647, %v1478_v41  ;;  %v1442_v57 = vadd.f32 %v1441_v34, %v4133_v8  ;;  %vm1486_vm13 = vcmp.ge.f32.partialorder %v1478_v41, 0.0  ;;  %v3711_v22 = vsel %vm1487_vm12, 1.0, %v4124_v10 }
 0x2e0   : > { %v1511_v33 = vmul.f32 0.3275911, %v1503_v40  ;;  %v1481_v21 = vmul.f32 0.70710677, %v1447_v51  ;;  %v1615_v24 = vsub.f32 0.0, %v1503_v40  ;;  %v3721_v28 = vsel %vm1486_vm13, 1.0, %v4124_v10 }
 0x2e1   : > { %v1510_v2 = vmul.f32 0.3275911, %v1502_v32  ;;  %v3694_v29 = vmul.f32 0.70710677, %v1442_v57  ;;  %v2827_v31 = vpop.f32.mrb[6].mxu0  ;;  %v1614_v18 = vsub.f32 0.0, %v1502_v32 }
 0x2e2   : > { %v1519_v44 = vadd.f32 1.0, %v1511_v33  ;;  %v1505_v5 = vand.u32 2147483647, %v1481_v21  ;;  %v1451_v53 = vpop.f32.mrb[7].mxu0  ;;  %v3700_v46 = vadd.f32 %v2827_v31, %v4134_v58  ;;  %v1623_v3 = vmul.f32 %v1615_v24, %v1503_v40  ;;  %v3717_v36 = vld [vmem:[#allocation2 + $0x8] sm:$0xff]  ;;  %v3728_v54 = vld [vmem:[#allocation2] sm:$0xff] }
 0x2e3   : > { %v1518_v48 = vadd.f32 1.0, %v1510_v2  ;;  %v1504_v50 = vand.u32 2147483647, %v3694_v29  ;;  %v3705_v56 = vadd.f32 %v1451_v53, %v4135_v26  ;;  %vm1489_vm14 = vcmp.ge.f32.partialorder %v1481_v21, 0.0  ;;  %v4136_v40 = vld [vmem:[#allocation18_spill] sm:$0xff] }
 0x2e4   : > { %3062 = vrcp.f32 %v1519_v44  ;;  %v1513_v38 = vmul.f32 0.3275911, %v1505_v5  ;;  %v3708_v6 = vmul.f32 0.70710677, %v3700_v46  ;;  %v1617_v16 = vsub.f32 0.0, %v1505_v5 }
 0x2e5   : > { %3064 = vrcp.f32 %v1518_v48  ;;  %v2830_v23 = vpop.f32.mrb[8].mxu0  ;;  %v1512_v55 = vmul.f32 0.3275911, %v1504_v50  ;;  %v3714_v14 = vmul.f32 0.70710677, %v3705_v56  ;;  %v1616_v4 = vsub.f32 0.0, %v1504_v50 }
 0x2e6   : > { %v1461_v13 = vpop.f32.mrb[9].mxu0  ;;  %v1521_v12 = vadd.f32 1.0, %v1513_v38  ;;  %v1507_v45 = vand.u32 2147483647, %v3708_v6  ;;  %v3723_v30 = vmul.f32 0.5, %v1447_v51  ;;  %v3725_v52 = vmul.f32 0.5, %v1442_v57 }
 0x2e7   : > { %v1520_v39 = vadd.f32 1.0, %v1512_v55  ;;  %v1506_v49 = vand.u32 2147483647, %v3714_v14  ;;  %v1632_v60 = vmul.f32 1.442695, %v1623_v3  ;;  %v1622_v61 = vmul.f32 %v1614_v18, %v1502_v32  ;;  %v4137_v32 = vld [vmem:[#allocation17_spill] sm:$0xff] }
 0x2e8   : > { %3066 = vrcp.f32 %v1521_v12  ;;  %v1515_v27 = vmul.f32 0.3275911, %v1507_v45  ;;  %v3731_v62 = vsel %vm1489_vm14, 1.0, %v4124_v10  ;;  %v1625_v47 = vmul.f32 %v1617_v16, %v1505_v5 }
 0x2e9   : > { %3068 = vrcp.f32 %v1520_v39  ;;  %v1514_v19 = vmul.f32 0.3275911, %v1506_v49  ;;  %v1774_v63 = vsel %vm781_vm1, %v3717_v36, 0.0  ;;  %v1624_v0 = vmul.f32 %v1616_v4, %v1504_v50 }
 0x2ea   : > { %v1523_v9 = vadd.f32 1.0, %v1515_v27  ;;  %v1619_v42 = vsub.f32 0.0, %v1507_v45  ;;  %1775 = vadd.xlane.f32.xlu0 %v1774_v63  ;;  %v1771_v25 = vsel %vm781_vm1, %v3728_v54, 0.0  ;;  %v1618_v43 = vsub.f32 0.0, %v1506_v49 }
 0x2eb   : > { %v1522_v41 = vadd.f32 1.0, %v1514_v19  ;;  %1772 = vadd.xlane.f32.xlu1 %v1771_v25  ;;  %v3743_v7 = vadd.f32 %v2830_v23, %v4136_v40  ;;  %v1630_v34 = vmul.f32 1.442695, %v1622_v61  ;;  %v3747_v8 = vadd.f32 %v1461_v13, %v4137_v32 }
 0x2ec   : > { %3070 = vrcp.f32 %v1523_v9  ;;  %v1636_v33 = vmul.f32 1.442695, %v1625_v47  ;;  %vm1488_vm15 = vcmp.ge.f32.partialorder %v3694_v29, 0.0  ;;  %v1634_v21 = vmul.f32 1.442695, %v1624_v0 }
 0x2ed   : > { %3072 = vrcp.f32 %v1522_v41  ;;  %v3751_v44 = vmul.f32 0.70710677, %v3743_v7  ;;  %v1627_v5 = vmul.f32 %v1619_v42, %v1507_v45  ;;  %v1626_v53 = vmul.f32 %v1618_v43, %v1506_v49 }
 0x2ee   : > { %v3735_v1 = vpop.eup %3062  ;;  %3074 = vpow2.f32 %v1632_v60  ;;  %v3757_v24 = vmul.f32 0.70710677, %v3747_v8  ;;  %v3765_v13 = vsel %vm1488_vm15, 1.0, %v4124_v10  ;;  %v1787_v63 = vmul.f32 %v3728_v54, %v3728_v54 }
 0x2ef   : > { %v3739_v35 = vpop.eup %3064  ;;  %v1543_v37 = vmul.f32 1.0614054, %v3735_v1  ;;  %3076 = vpow2.f32 %v1630_v34  ;;  %v1509_v50 = vand.u32 2147483647, %v3751_v44  ;;  %v1640_v4 = vmul.f32 1.442695, %v1627_v5 }
 0x2f0   : > { %v1542_v51 = vmul.f32 1.0614054, %v3739_v35  ;;  %3078 = vpow2.f32 %v1636_v33  ;;  %v1508_v12 = vand.u32 2147483647, %v3757_v24  ;;  %v1638_v45 = vmul.f32 1.442695, %v1626_v53 }
 0x2f1   : > { %v1551_v57 = vadd.f32 -1.4531521, %v1543_v37  ;;  %3080 = vpow2.f32 %v1634_v21  ;;  %v1517_v55 = vmul.f32 0.3275911, %v1509_v50  ;;  %v1621_v19 = vsub.f32 0.0, %v1509_v50 }
 0x2f2   : > { %v1550_v2 = vadd.f32 -1.4531521, %v1542_v51  ;;  %v3753_v31 = vpop.eup %3066  ;;  %v1516_v61 = vmul.f32 0.3275911, %v1508_v12  ;;  %v1620_v51 = vsub.f32 0.0, %v1508_v12  ;;  %v1788_v5 = vmul.f32 %v3717_v36, %v3717_v36 }
 0x2f3   : > { %v1559_v48 = vmul.f32 %v3735_v1, %v1551_v57  ;;  %v1545_v23 = vmul.f32 1.0614054, %v3753_v31  ;;  %v3768_v26 = vpop.eup %3068  ;;  %v1525_v60 = vadd.f32 1.0, %v1517_v55  ;;  %vm1491_vm0 = vcmp.ge.f32.partialorder %v3708_v6, 0.0 }
 0x2f4   : > { %v1558_v38 = vmul.f32 %v3739_v35, %v1550_v2  ;;  %v1544_v39 = vmul.f32 1.0614054, %v3768_v26  ;;  %v1524_v25 = vadd.f32 1.0, %v1516_v61  ;;  %vm1490_vm2 = vcmp.ge.f32.partialorder %v3714_v14, 0.0 }
 0x2f5   : > { %v1567_v58 = vadd.f32 1.4214138, %v1559_v48  ;;  %v1553_v18 = vadd.f32 -1.4531521, %v1545_v23  ;;  %3082 = vrcp.f32 %v1525_v60  ;;  %v1498_v14 = vsel %vm1490_vm2, 1.0, %v4124_v10 }
 0x2f6   : > { %v1566_v3 = vadd.f32 1.4214138, %v1558_v38  ;;  %v1552_v47 = vadd.f32 -1.4531521, %v1544_v39  ;;  %v3776_v0 = vpop.eup %3070  ;;  %3084 = vrcp.f32 %v1524_v25  ;;  %v1791_v39 = vsel %vm781_vm1, %v1787_v63, 0.0 }
 0x2f7   : > { %v1575_v16 = vmul.f32 %v3735_v1, %v1567_v58  ;;  %v1561_v29 = vmul.f32 %v3753_v31, %v1553_v18  ;;  %v3778_v37 = vpop.eup %3072  ;;  %v1547_v40 = vmul.f32 1.0614054, %v3776_v0  ;;  %3086 = vpow2.f32 %v1640_v4  ;;  %1792 = vadd.xlane.f32.xlu0 %v1791_v39 }
 0x2f8   : > { %v1574_v49 = vmul.f32 %v3739_v35, %v1566_v3  ;;  %v1560_v43 = vmul.f32 %v3768_v26, %v1552_v47  ;;  %v3075_v34 = vpop.eup %3074  ;;  %v1546_v33 = vmul.f32 1.0614054, %v3778_v37  ;;  %3088 = vpow2.f32 %v1638_v45 }
 0x2f9   : > { %v1583_v27 = vadd.f32 -0.28449672, %v1575_v16  ;;  %v1569_v42 = vadd.f32 1.4214138, %v1561_v29  ;;  %v1555_v48 = vadd.f32 -1.4531521, %v1547_v40  ;;  %v3077_v53 = vpop.eup %3076 }
 0x2fa   : > { %v1582_v9 = vadd.f32 -0.28449672, %v1574_v49  ;;  %v1568_v21 = vadd.f32 1.4214138, %v1560_v43  ;;  %v1554_v58 = vadd.f32 -1.4531521, %v1546_v33  ;;  %v3079_v3 = vpop.eup %3078  ;;  %v1628_v43 = vmul.f32 %v1620_v51, %v1508_v12 }
 0x2fb   : > { %v1591_v41 = vmul.f32 %v3735_v1, %v1583_v27  ;;  %v1577_v57 = vmul.f32 %v3753_v31, %v1569_v42  ;;  %v1563_v16 = vmul.f32 %v3776_v0, %v1555_v48  ;;  %v3081_v49 = vpop.eup %3080  ;;  %v1629_v27 = vmul.f32 %v1621_v19, %v1509_v50 }
 0x2fc   : > { %v1590_v32 = vmul.f32 %v3739_v35, %v1582_v9  ;;  %v1576_v55 = vmul.f32 %v3768_v26, %v1568_v21  ;;  %v1562_v61 = vmul.f32 %v3778_v37, %v1554_v58  ;;  %vm1493_vm4 = vcmp.ge.f32.partialorder %v3751_v44, 0.0 }
 0x2fd   : > { %v1599_v2 = vadd.f32 0.2548296, %v1591_v41  ;;  %v1585_v23 = vadd.f32 -0.28449672, %v1577_v57  ;;  %v1571_v9 = vadd.f32 1.4214138, %v1563_v16 }
 0x2fe   : > { %v1598_v38 = vadd.f32 0.2548296, %v1590_v32  ;;  %v1584_v47 = vadd.f32 -0.28449672, %v1576_v55  ;;  %v1570_v41 = vadd.f32 1.4214138, %v1562_v61 }
 0x2ff   : > { %v1607_v18 = vmul.f32 %v3735_v1, %v1599_v2  ;;  %v1593_v60 = vmul.f32 %v3753_v31, %v1585_v23  ;;  %v1794_v1 = vsel %vm781_vm1, %v1788_v5, 0.0  ;;  %v3798_v32 = vpop.eup %3082  ;;  %v1644_v57 = vmul.f32 1.442695, %v1629_v27 }
 0x300   : > { %v1606_v29 = vmul.f32 %v3739_v35, %v1598_v38  ;;  %1795 = vadd.xlane.f32.xlu1 %v1794_v1  ;;  %v1592_v40 = vmul.f32 %v3768_v26, %v1584_v47  ;;  %v1579_v35 = vmul.f32 %v3776_v0, %v1571_v9  ;;  %v1549_v12 = vmul.f32 1.0614054, %v3798_v32  ;;  %v3804_v51 = vpop.eup %3084 }
 0x301   : > { %v1647_v4 = vmul.f32 %v3075_v34, %v1607_v18  ;;  %v1601_v25 = vadd.f32 0.2548296, %v1593_v60  ;;  %v1578_v34 = vmul.f32 %v3778_v37, %v1570_v41  ;;  %v3087_v18 = vpop.eup %3086  ;;  %v1548_v39 = vmul.f32 1.0614054, %v3804_v51 }
 0x302   : > { %v1646_v42 = vmul.f32 %v3077_v53, %v1606_v29  ;;  %v1600_v2 = vadd.f32 0.2548296, %v1592_v40  ;;  %v1587_v21 = vadd.f32 -0.28449672, %v1579_v35  ;;  %v1642_v53 = vmul.f32 1.442695, %v1628_v43  ;;  %v3089_v41 = vpop.eup %3088 }
 0x303   : > { %v1655_v63 = vsub.f32 1.0, %v1647_v4  ;;  %v1609_v19 = vmul.f32 %v3753_v31, %v1601_v25  ;;  %v1586_v45 = vadd.f32 -0.28449672, %v1578_v34  ;;  %v1557_v58 = vadd.f32 -1.4531521, %v1549_v12 }
 0x304   : > { %v1654_v50 = vsub.f32 1.0, %v1646_v42  ;;  %v1608_v23 = vmul.f32 %v3768_v26, %v1600_v2  ;;  %v1595_v31 = vmul.f32 %v3776_v0, %v1587_v21  ;;  %v1556_v4 = vadd.f32 -1.4531521, %v1548_v39 }
 0x305   : > { %v1663_v33 = vmul.f32 %v1655_v63, %v3711_v22  ;;  %v1649_v5 = vmul.f32 %v3079_v3, %v1609_v19  ;;  %v1594_v16 = vmul.f32 %v3778_v37, %v1586_v45  ;;  %v1565_v3 = vmul.f32 %v3798_v32, %v1557_v58 }
 0x306   : > { %v1662_v48 = vmul.f32 %v1654_v50, %v3721_v28  ;;  %v1648_v60 = vmul.f32 %v3081_v49, %v1608_v23  ;;  %v1603_v28 = vadd.f32 0.2548296, %v1595_v31  ;;  %3090 = vpow2.f32 %v1644_v57 }
 0x307   : > { %v1671_v38 = vadd.f32 1.0, %v1663_v33  ;;  %v1657_v22 = vsub.f32 1.0, %v1649_v5  ;;  %v1602_v27 = vadd.f32 0.2548296, %v1594_v16  ;;  %v1573_v1 = vadd.f32 1.4214138, %v1565_v3 }
 0x308   : > { %v1670_v55 = vadd.f32 1.0, %v1662_v48  ;;  %v1656_v47 = vsub.f32 1.0, %v1648_v60  ;;  %v1611_v9 = vmul.f32 %v3776_v0, %v1603_v28  ;;  %3092 = vpow2.f32 %v1642_v53 }
 0x309   : > { %v1679_v29 = vmul.f32 %v1671_v38, %v3696_v15  ;;  %v1665_v26 = vmul.f32 %v1657_v22, %v3731_v62  ;;  %v1610_v25 = vmul.f32 %v3778_v37, %v1602_v27  ;;  %v1564_v15 = vmul.f32 %v3804_v51, %v1556_v4 }
 0x30a   : > { %v1678_v61 = vmul.f32 %v1670_v55, %v3702_v17  ;;  %v1664_v43 = vmul.f32 %v1656_v47, %v3765_v13  ;;  %v1651_v17 = vmul.f32 %v3087_v18, %v1611_v9  ;;  %v1581_v62 = vmul.f32 %v3798_v32, %v1573_v1  ;;  %v1853_v9 = vld [vmem:[%s3349_s15 + $0x10] sm:$0xff]  ;;  %v1854_v1 = vld [vmem:[%s3349_s15 + $0x18] sm:$0xff] }
 0x30b   : > { %v1673_v42 = vadd.f32 1.0, %v1665_v26  ;;  %v1650_v63 = vmul.f32 %v3089_v41, %v1610_v25  ;;  %v1572_v0 = vadd.f32 1.4214138, %v1564_v15  ;;  %v1499_v19 = vsel %vm1491_vm0, 1.0, %v4124_v10  ;;  %v1852_v26 = vld [vmem:[%s3349_s15 + $0x8] sm:$0xff] }
 0x30c   : > { %v2932_v49 = vpack.c.bf16 %v1679_v29, %v1678_v61  ;;  %v1672_v37 = vadd.f32 1.0, %v1664_v43  ;;  %v1659_v35 = vsub.f32 1.0, %v1651_v17  ;;  %v1589_v50 = vadd.f32 -0.28449672, %v1581_v62 }
 0x30d   : > { %v1681_v40 = vmul.f32 %v1673_v42, %v3723_v30  ;;  %v1658_v13 = vsub.f32 1.0, %v1650_v63  ;;  %v1580_v6 = vmul.f32 %v3804_v51, %v1572_v0  ;;  %v1475_v30 = vmul.f32 0.5, %v3700_v46 }
 0x30e   : > { %2933 = vmatprep.subr.bf16.mxu1 %v2932_v49  ;;  %v1680_v34 = vmul.f32 %v1672_v37, %v3725_v52  ;;  %v1667_v57 = vmul.f32 %v1659_v35, %v1499_v19  ;;  %v1597_v33 = vmul.f32 %v3798_v32, %v1589_v50  ;;  %v1474_v45 = vmul.f32 0.5, %v3705_v56 }
 0x30f   : > { %2935 = vmatpush3.bf16.msra.mxu1 %v2932_v49  ;;  %v1666_v2 = vmul.f32 %v1658_v13, %v1498_v14  ;;  %v1588_v21 = vadd.f32 -0.28449672, %v1580_v6  ;;  %v1501_v39 = vsel %vm1493_vm4, 1.0, %v4124_v10  ;;  %vm1492_vm5 = vcmp.ge.f32.partialorder %v3757_v24, 0.0  ;;  %v3851_v6 = vld [vmem:[%s741_s27] ss:$0 sm:$0xff] }
 0x310   : > { %v1675_v12 = vadd.f32 1.0, %v1667_v57  ;;  %v1605_v48 = vadd.f32 0.2548296, %v1597_v33  ;;  %v2936_v5 = vpack.c.bf16 %v1681_v40, %v1680_v34  ;;  %v3091_v23 = vpop.eup %3090  ;;  %v1500_v28 = vsel %vm1492_vm5, 1.0, %v4124_v10  ;;  %v3859_v33 = vld [vmem:[%s744_s0] ss:$0 sm:$0xff] }
 0x311   : > { %v1674_v53 = vadd.f32 1.0, %v1666_v2  ;;  %v1596_v38 = vmul.f32 %v3804_v51, %v1588_v21  ;;  %v1477_v3 = vmul.f32 0.5, %v3743_v7  ;;  %v1476_v4 = vmul.f32 0.5, %v3747_v8 }
 0x312   : > { %v1683_v31 = vmul.f32 %v1675_v12, %v1475_v30  ;;  %v1613_v52 = vmul.f32 %v3798_v32, %v1605_v48  ;;  %2937 = vmatprep.subr.bf16.mxu1 %v2936_v5  ;;  %v3093_v46 = vpop.eup %3092  ;;  %v2952_v25 = vpack.c.bf16 %v1854_v1, %v1853_v9 }
 0x313   : > { %v1682_v58 = vmul.f32 %v1674_v53, %v1474_v45  ;;  %v1604_v18 = vadd.f32 0.2548296, %v1596_v38  ;;  %2939 = vmatpush3.bf16.msra.mxu1 %v2936_v5 }
 0x314   : > { %v1653_v55 = vmul.f32 %v3091_v23, %v1613_v52  ;;  %v3118_v23 = vld [vmem:[#allocation2 + $0x18] sm:$0xff]  ;;  %v3119_v52 = vld [vmem:[#allocation2 + $0x10] sm:$0xff] }
 0x315   : > { %v1612_v22 = vmul.f32 %v3804_v51, %v1604_v18  ;;  %v2940_v56 = vpack.c.bf16 %v1683_v31, %v1682_v58  ;;  %v1851_v51 = vld [vmem:[%s3349_s15] sm:$0xff]  ;;  %s4140_s15 = sld [smem:[#allocation26_spill]] (!%p2695_p6) }
 0x316   : > { %v1661_v16 = vsub.f32 1.0, %v1653_v55  ;;  %v2948_v24 = vpack.c.bf16 %v1852_v26, %v1851_v51  ;;  %v2073_v26 = vld [vmem:[%s3354_s1 + $0x30] sm:$0xff] }
 0x317   : > { %v1652_v32 = vmul.f32 %v3093_v46, %v1612_v22  ;;  %2941 = vmatprep.subr.bf16.mxu1 %v2940_v56 }
 0x318   : > { %v1669_v29 = vmul.f32 %v1661_v16, %v1501_v39  ;;  %2943 = vmatpush3.bf16.msra.mxu1 %v2940_v56  ;;  %2949 = vmatprep.subr.bf16.mxu0 %v2948_v24  ;;  %v2067_v39 = vld [vmem:[%s3354_s1] sm:$0xff] }
 0x319   : > { %v1660_v60 = vsub.f32 1.0, %v1652_v32  ;;  %2951 = vmatpush3.bf16.msra.mxu0 %v2948_v24  ;;  %v2068_v32 = vld [vmem:[%s3354_s1 + $0x8] sm:$0xff] }
 0x31a   : > { %v1677_v44 = vadd.f32 1.0, %v1669_v29  ;;  %2953 = vmatprep.subr.bf16.mxu0 %v2952_v25  ;;  %v2956_v29 = vpack.c.bf16 %v2068_v32, %v2067_v39 }
 0x31b   : > { %v1668_v61 = vmul.f32 %v1660_v60, %v1500_v28  ;;  %v2069_v60 = vld [vmem:[%s3354_s1 + $0x10] sm:$0xff] }
 0x31c   : > { %v1685_v27 = vmul.f32 %v1677_v44, %v1477_v3  ;;  %v2070_v44 = vld [vmem:[%s3354_s1 + $0x18] sm:$0xff]  ;;  %v2071_v3 = vld [vmem:[%s3354_s1 + $0x20] sm:$0xff] }
 0x31d   : > { %v1676_v47 = vadd.f32 1.0, %v1668_v61  ;;  %2955 = vmatpush3.bf16.msra.mxu0 %v2952_v25  ;;  %v2960_v28 = vpack.c.bf16 %v2070_v44, %v2069_v60  ;;  %v2072_v61 = vld [vmem:[%s3354_s1 + $0x28] sm:$0xff] }
 0x31e   : > { %v2964_v51 = vpack.c.bf16 %v2072_v61, %v2071_v3 }
 0x31f   : > { %v1684_v42 = vmul.f32 %v1676_v47, %v1476_v4  ;;  %v3898_v47 = vld [vmem:[%s752_s16] ss:$0 sm:$0xff] }
 0x321   : > { %v2944_v15 = vpack.c.bf16 %v1685_v27, %v1684_v42  ;;  %v2074_v27 = vld [vmem:[%s3354_s1 + $0x38] sm:$0xff] }
 0x322   : > { %v2968_v4 = vpack.c.bf16 %v2074_v27, %v2073_v26 }
 0x323   : > { %2945 = vmatprep.subr.bf16.mxu1 %v2944_v15 }
 0x324   : > { %2947 = vmatpush3.bf16.msra.mxu1 %v2944_v15 }
 0x325   : > { %2957 = vmatprep.subr.bf16.mxu1 %v2956_v29 }
 0x327   : > { %2848 = vmatmul.mubr.msk.f32.vlgmr.msra.gmra.mrb[8].mxu1 %vm1279_vm3, %v3660_v11 }
 0x328   : > { %2959 = vmatpush3.bf16.msra.mxu1 %v2956_v29 }
 0x329   : > { %2961 = vmatprep.subr.bf16.mxu1 %v2960_v28 }
 0x32c   : > { %2963 = vmatpush3.bf16.msra.mxu1 %v2960_v28 }
 0x32d   : > { %2965 = vmatprep.subr.bf16.mxu1 %v2964_v51 }
 0x330   : > { %2967 = vmatpush3.bf16.msra.mxu1 %v2964_v51 }
 0x331   : > { %2969 = vmatprep.subr.bf16.mxu1 %v2968_v4 }
 0x334   : > { %2971 = vmatpush3.bf16.msra.mxu1 %v2968_v4 }
 0x377   : > { %v1776_v49 = vpop.xlane.xlu0 %1775 }
 0x378   : > { %v1773_v7 = vpop.xlane.xlu1 %1772  ;;  %v1784_v8 = vmul.f32 0.03125, %v1776_v49 }
 0x379   : > { %v1783_v41 = vmul.f32 0.03125, %v1773_v7 }
 0x37a   : > { %v1812_v0 = vmul.f32 %v1784_v8, %v1784_v8  ;;  %v1808_v34 = vsub.f32 %v3717_v36, %v1784_v8 }
 0x37b   : > { %v1811_v43 = vmul.f32 %v1783_v41, %v1783_v41  ;;  %v1807_v11 = vsub.f32 %v3728_v54, %v1783_v41 }
 0x384   : > { %v1793_v17 = vpop.xlane.xlu0 %1792 }
 0x385   : > { %v1803_v62 = vmul.f32 0.03125, %v1793_v17 }
 0x387   : > { %v1815_v40 = vsub.f32 %v1803_v62, %v1811_v43 }
 0x389   : > { %v1819_v35 = vadd.f32 1e-05, %v1815_v40 }
 0x38b   : > { %3094 = vrsqrt.f32 %v1819_v35 }
 0x38d   : > { %v1796_v63 = vpop.xlane.xlu1 %1795 }
 0x38e   : > { %v1804_v37 = vmul.f32 0.03125, %v1796_v63 }
 0x390   : > { %v1816_v50 = vsub.f32 %v1804_v37, %v1812_v0 }
 0x392   : > { %v1820_v19 = vadd.f32 1e-05, %v1816_v50 }
 0x394   : > { %3096 = vrsqrt.f32 %v1820_v19 }
 0x395   : > { %v3095_v13 = vpop.eup %3094 }
 0x396   : > { %v1827_v57 = vmul.f32 %v3095_v13, %v1807_v11 }
 0x398   : > { %v1837_v21 = vmul.f32 %v3851_v6, %v1827_v57 }
 0x39a   : > { %v1847_v12 = vadd.f32 %v3859_v33, %v1837_v21 }
 0x39c   : > { %2858 = vmatprep.mubr.msk.f32.mxu0 %vm781_vm1, %v1847_v12 }
 0x39e   : > { %v3097_v14 = vpop.eup %3096 }
 0x39f   : > { %v1828_v2 = vmul.f32 %v3097_v14, %v1808_v34 }
 0x3a1   : > { %v1838_v30 = vmul.f32 %v3851_v6, %v1828_v2 }
 0x3a3   : > { %v1848_v48 = vadd.f32 %v3859_v33, %v1838_v30 }
 0x3a5   : > { %2859 = vmatmul.mubr.msk.f32.vlgmr.msra.gmra.mrb[10].mxu0 %vm781_vm1, %v1848_v48 }
 0x3fa   : > { %v2849_v5 = vpop.f32.mrb[8].mxu1 }
 0x3fb   : > { %v1758_v45 = vadd.f32 %v2849_v5, %v3680_v20  ;;  %v1752_v53 = vpop.f32.mrb[9].mxu1 }
 0x3fc   : > { %v1753_v38 = vadd.f32 %v1752_v53, %v3682_v59 }
 0x3fd   : > { %v1762_v31 = vadd.f32 %v3118_v23, %v1758_v45 }
 0x3fe   : > { %v1761_v58 = vadd.f32 %v3119_v52, %v1753_v38 }
 0x3ff   : > { %1764 = vst.msk [vmem:[#allocation2 + $0x18] sm:$0xff] %vm781_vm1, %v1762_v31 }
 0x400   : > { %1763 = vst.msk [vmem:[#allocation2 + $0x10] sm:$0xff] %vm781_vm1, %v1761_v58 }
 0x406   : > { %v3871_v18 = vld [vmem:[#allocation2 + $0x18] sm:$0xff] }
 0x407   : > { %v1780_v55 = vsel %vm781_vm1, %v3871_v18, 0.0  ;;  %v3875_v20 = vld [vmem:[#allocation2 + $0x10] sm:$0xff]  ;;  %v1790_v59 = vmul.f32 %v3871_v18, %v3871_v18 }
 0x408   : > { %1781 = vadd.xlane.f32.xlu1 %v1780_v55  ;;  %v1777_v46 = vsel %vm781_vm1, %v3875_v20, 0.0  ;;  %v1789_v22 = vmul.f32 %v3875_v20, %v3875_v20 }
 0x409   : > { %1778 = vadd.xlane.f32.xlu0 %v1777_v46  ;;  %v1800_v56 = vsel %vm781_vm1, %v1790_v59, 0.0 }
 0x40a   : > { %v1797_v16 = vsel %vm781_vm1, %v1789_v22, 0.0 }
 0x40c   : > { %1801 = vadd.xlane.f32.xlu1 %v1800_v56 }
 0x40d   : > { %1798 = vadd.xlane.f32.xlu0 %v1797_v16 }
 0x478   : > { %v2860_v24 = vpop.f32.mrb[10].mxu0 }
 0x479   : > { %v3901_v9 = vadd.f32 %v2860_v24, %v3898_v47  ;;  %v1940_v1 = vpop.f32.mrb[11].mxu0 }
 0x47a   : > { %v3904_v42 = vadd.f32 %v3898_v47, %v1940_v1 }
 0x47b   : > { %v1964_v25 = vmul.f32 0.70710677, %v3901_v9 }
 0x47c   : > { %v3908_v15 = vmul.f32 0.70710677, %v3904_v42 }
 0x47d   : > { %v1976_v7 = vand.u32 2147483647, %v1964_v25  ;;  %vm1968_vm6 = vcmp.ge.f32.partialorder %v1964_v25, 0.0  ;;  %v1960_v25 = vmul.f32 0.5, %v3901_v9 }
 0x47e   : > { %v1975_v49 = vand.u32 2147483647, %v3908_v15  ;;  %vm1967_vm7 = vcmp.ge.f32.partialorder %v3908_v15, 0.0  ;;  %v1972_v1 = vsel %vm1968_vm6, 1.0, %v4124_v10 }
 0x47f   : > { %v1980_v41 = vmul.f32 0.3275911, %v1976_v7  ;;  %v2032_v62 = vsub.f32 0.0, %v1976_v7 }
 0x480   : > { %v1979_v8 = vmul.f32 0.3275911, %v1975_v49  ;;  %v2031_v63 = vsub.f32 0.0, %v1975_v49 }
 0x481   : > { %v1984_v43 = vadd.f32 1.0, %v1980_v41  ;;  %v2036_v40 = vmul.f32 %v2032_v62, %v1976_v7  ;;  %v1971_v41 = vsel %vm1967_vm7, 1.0, %v4124_v10 }
 0x482   : > { %v1983_v17 = vadd.f32 1.0, %v1979_v8  ;;  %v2035_v50 = vmul.f32 %v2031_v63, %v1975_v49 }
 0x483   : > { %3098 = vrcp.f32 %v1984_v43  ;;  %v2041_v13 = vmul.f32 1.442695, %v2036_v40 }
 0x484   : > { %3100 = vrcp.f32 %v1983_v17  ;;  %v2039_v14 = vmul.f32 1.442695, %v2035_v50  ;;  %v1959_v17 = vmul.f32 0.5, %v3904_v42 }
 0x485   : > { %3102 = vpow2.f32 %v2041_v13 }
 0x486   : > { %3104 = vpow2.f32 %v2039_v14 }
 0x48d   : > { %v3099_v0 = vpop.eup %3098 }
 0x48e   : > { %v3101_v37 = vpop.eup %3100  ;;  %v1996_v35 = vmul.f32 1.0614054, %v3099_v0 }
 0x48f   : > { %v1995_v19 = vmul.f32 1.0614054, %v3101_v37  ;;  %v3103_v28 = vpop.eup %3102 }
 0x490   : > { %v2000_v11 = vadd.f32 -1.4531521, %v1996_v35  ;;  %v3105_v51 = vpop.eup %3104 }
 0x491   : > { %v1999_v34 = vadd.f32 -1.4531521, %v1995_v19 }
 0x492   : > { %v2004_v57 = vmul.f32 %v3099_v0, %v2000_v11 }
 0x493   : > { %v2003_v2 = vmul.f32 %v3101_v37, %v1999_v34  ;;  %v3931_v34 = vld [vmem:[%s760_s3] ss:$0 sm:$0xff]  ;;  %s4138_s3 = sld [smem:[#allocation27_spill]] (!%p2695_p6) }
 0x494   : > { %v2008_v21 = vadd.f32 1.4214138, %v2004_v57 }
 0x495   : > { %v2007_v30 = vadd.f32 1.4214138, %v2003_v2  ;;  %v1782_v48 = vpop.xlane.xlu1 %1781 }
 0x496   : > { %v2012_v12 = vmul.f32 %v3099_v0, %v2008_v21  ;;  %v1786_v45 = vmul.f32 0.03125, %v1782_v48  ;;  %v1779_v53 = vpop.xlane.xlu0 %1778 }
 0x497   : > { %v2011_v5 = vmul.f32 %v3101_v37, %v2007_v30  ;;  %v1785_v23 = vmul.f32 0.03125, %v1779_v53 }
 0x498   : > { %v2016_v38 = vadd.f32 -0.28449672, %v2012_v12  ;;  %v1814_v59 = vmul.f32 %v1786_v45, %v1786_v45 }
 0x499   : > { %v2015_v31 = vadd.f32 -0.28449672, %v2011_v5  ;;  %v1802_v58 = vpop.xlane.xlu1 %1801  ;;  %v1813_v16 = vmul.f32 %v1785_v23, %v1785_v23 }
 0x49a   : > { %v2020_v52 = vmul.f32 %v3099_v0, %v2016_v38  ;;  %v1806_v46 = vmul.f32 0.03125, %v1802_v58  ;;  %v1799_v22 = vpop.xlane.xlu0 %1798 }
 0x49b   : > { %v2019_v55 = vmul.f32 %v3101_v37, %v2015_v31  ;;  %v1805_v39 = vmul.f32 0.03125, %v1799_v22 }
 0x49c   : > { %v2024_v56 = vadd.f32 0.2548296, %v2020_v52  ;;  %v1818_v29 = vsub.f32 %v1806_v46, %v1814_v59 }
 0x49d   : > { %v2023_v32 = vadd.f32 0.2548296, %v2019_v55  ;;  %v1817_v44 = vsub.f32 %v1805_v39, %v1813_v16 }
 0x49e   : > { %v2028_v60 = vmul.f32 %v3099_v0, %v2024_v56  ;;  %v1822_v61 = vadd.f32 1e-05, %v1818_v29  ;;  %v1810_v0 = vsub.f32 %v3871_v18, %v1786_v45 }
 0x49f   : > { %v2027_v3 = vmul.f32 %v3101_v37, %v2023_v32  ;;  %v1821_v27 = vadd.f32 1e-05, %v1817_v44  ;;  %v1809_v37 = vsub.f32 %v3875_v20, %v1785_v23 }
 0x4a0   : > { %v2048_v26 = vmul.f32 %v3103_v28, %v2028_v60  ;;  %3106 = vrsqrt.f32 %v1822_v61 }
 0x4a1   : > { %v2047_v4 = vmul.f32 %v3105_v51, %v2027_v3  ;;  %3108 = vrsqrt.f32 %v1821_v27 }
 0x4a2   : > { %v2052_v24 = vsub.f32 1.0, %v2048_v26 }
 0x4a3   : > { %v2051_v7 = vsub.f32 1.0, %v2047_v4 }
 0x4a4   : > { %v2056_v49 = vmul.f32 %v2052_v24, %v1972_v1 }
 0x4a5   : > { %v2055_v8 = vmul.f32 %v2051_v7, %v1971_v41 }
 0x4a6   : > { %v2060_v43 = vadd.f32 1.0, %v2056_v49 }
 0x4a7   : > { %v2059_v62 = vadd.f32 1.0, %v2055_v8 }
 0x4a8   : > { %v2064_v15 = vmul.f32 %v2060_v43, %v1960_v25 }
 0x4a9   : > { %v2063_v63 = vmul.f32 %v2059_v62, %v1959_v17 }
 0x4aa   : > { %v3107_v40 = vpop.eup %3106 }
 0x4ab   : > { %2880 = vmatprep.mubr.msk.f32.mxu1 %vm1279_vm3, %v2063_v63  ;;  %v3109_v35 = vpop.eup %3108  ;;  %v1830_v50 = vmul.f32 %v3107_v40, %v1810_v0 }
 0x4ac   : > { %2881 = vmatmul.mubr.msk.f32.vlgmr.msra.gmra.mrb[10].mxu1 %vm1279_vm3, %v2064_v15  ;;  %v1829_v19 = vmul.f32 %v3109_v35, %v1809_v37 }
 0x4ad   : > { %v1840_v42 = vmul.f32 %v3851_v6, %v1830_v50 }
 0x4ae   : > { %v1839_v11 = vmul.f32 %v3851_v6, %v1829_v19 }
 0x4af   : > { %v1850_v13 = vadd.f32 %v3859_v33, %v1840_v42 }
 0x4b0   : > { %v1849_v9 = vadd.f32 %v3859_v33, %v1839_v11 }
 0x4b2   : > { %2861 = vmatprep.mubr.msk.f32.mxu0 %vm781_vm1, %v1849_v9 }
 0x4b3   : > { %2862 = vmatmul.mubr.msk.f32.gmra.mrb[12].mxu0 %vm781_vm1, %v1850_v13 }
 0x57f   : > { %v2882_v57 = vpop.f32.mrb[10].mxu1 }
 0x580   : > { %v2166_v14 = vadd.f32 %v2882_v57, %v3931_v34  ;;  %v2160_v2 = vpop.f32.mrb[11].mxu1 }
 0x581   : > { %v2161_v6 = vadd.f32 %v3931_v34, %v2160_v2 }
 0x582   : > { %v3936_v21 = vadd.f32 %v2166_v14, %v3717_v36 }
 0x583   : > { %v3939_v33 = vadd.f32 %v2161_v6, %v3728_v54 }
 0x584   : > { %2184 = vst.msk [vmem:[#allocation2 + $0x8] sm:$0xff] %vm781_vm1, %v3936_v21 }
 0x585   : > { %2183 = vst.msk [vmem:[#allocation2] sm:$0xff] %vm781_vm1, %v3939_v33 }
 0x586   : > { %v2863_v30 = vpop.f32.mrb[12].mxu0 }
 0x587   : > { %v1956_v12 = vadd.f32 %v2863_v30, %v3898_v47  ;;  %v1950_v48 = vpop.f32.mrb[13].mxu0 }
 0x588   : > { %v1951_v5 = vadd.f32 %v3898_v47, %v1950_v48  ;;  %v2210_v48 = vmul.f32 (!%p2695_p6), %v3936_v21, %v3936_v21 }
 0x589   : > { %v1966_v45 = vmul.f32 0.70710677, %v1956_v12  ;;  %v1962_v11 = vmul.f32 0.5, %v1956_v12 }
 0x58a   : > { %v1965_v53 = vmul.f32 0.70710677, %v1951_v5  ;;  %v1961_v19 = vmul.f32 0.5, %v1951_v5  ;;  %v2209_v5 = vmul.f32 (!%p2695_p6), %v3939_v33, %v3939_v33 }
 0x58b   : > { %v1978_v38 = vand.u32 2147483647, %v1966_v45  ;;  %vm1970_vm8 = vcmp.ge.f32.partialorder %v1966_v45, 0.0  ;;  %v2216_v45 = vsel (!%p2695_p6), %vm781_vm1, %v2210_v48, 0.0 }
 0x58c   : > { %v1977_v36 = vand.u32 2147483647, %v1965_v53  ;;  %vm1969_vm9 = vcmp.ge.f32.partialorder %v1965_v53, 0.0  ;;  %v1974_v15 = vsel %vm1970_vm8, 1.0, %v4124_v10  ;;  %v2213_v53 = vsel (!%p2695_p6), %vm781_vm1, %v2209_v5, 0.0 }
 0x58d   : > { %v1982_v23 = vmul.f32 0.3275911, %v1978_v38  ;;  %v2034_v58 = vsub.f32 0.0, %v1978_v38  ;;  %v1973_v37 = vsel %vm1969_vm9, 1.0, %v4124_v10 }
 0x58e   : > { %v1981_v31 = vmul.f32 0.3275911, %v1977_v36  ;;  %v2033_v55 = vsub.f32 0.0, %v1977_v36 }
 0x58f   : > { %v1986_v54 = vadd.f32 1.0, %v1982_v23  ;;  %v2038_v46 = vmul.f32 %v2034_v58, %v1978_v38  ;;  %v2286_v58 = vld [vmem:[%s4138_s3 + $0x10] sm:$0xff] (!%p2695_p6) }
 0x590   : > { %v1985_v52 = vadd.f32 1.0, %v1981_v31  ;;  %v2037_v16 = vmul.f32 %v2033_v55, %v1977_v36  ;;  %v3184_v55 = vmov (!%p2695_p6), 0.0|0.0  }
 0x591   : > { %3110 = vrcp.f32 %v1986_v54  ;;  %v2045_v47 = vmul.f32 1.442695, %v2038_v46  ;;  %v2284_v54 = vld [vmem:[%s4138_s3] sm:$0xff] (!%p2695_p6)  ;;  %2972 = vmatprep.subr.bf16.mxu0 (!%p2695_p6), %v3184_v55  ;;  %2978 = vmatprep.subr.bf16.mxu1 (!%p2695_p6), %v3184_v55  ;;  %v2287_v46 = vld [vmem:[%s4138_s3 + $0x18] sm:$0xff] (!%p2695_p6) }
 0x592   : > { %3112 = vrcp.f32 %v1985_v52  ;;  %v2043_v44 = vmul.f32 1.442695, %v2037_v16  ;;  %v2285_v52 = vld [vmem:[%s4138_s3 + $0x8] sm:$0xff] (!%p2695_p6) }
 0x593   : > { %3114 = vpow2.f32 %v2045_v47 }
 0x594   : > { %3116 = vpow2.f32 %v2043_v44 }
 0x59b   : > { %v3111_v59 = vpop.eup %3110 }
 0x59c   : > { %v3113_v22 = vpop.eup %3112  ;;  %v1998_v56 = vmul.f32 1.0614054, %v3111_v59 }
 0x59d   : > { %v1997_v39 = vmul.f32 1.0614054, %v3113_v22  ;;  %v3115_v8 = vpop.eup %3114 }
 0x59e   : > { %v2002_v32 = vadd.f32 -1.4531521, %v1998_v56  ;;  %v3117_v17 = vpop.eup %3116  ;;  %v2976_v56 = vpack.c.bf16 (!%p2695_p6), %v2287_v46, %v2286_v58 }
 0x59f   : > { %v2001_v29 = vadd.f32 -1.4531521, %v1997_v39 }
 0x5a0   : > { %v2006_v60 = vmul.f32 %v3111_v59, %v2002_v32 }
 0x5a1   : > { %v2005_v28 = vmul.f32 %v3113_v22, %v2001_v29 }
 0x5a2   : > { %v2010_v3 = vadd.f32 1.4214138, %v2006_v60 }
 0x5a3   : > { %v2009_v61 = vadd.f32 1.4214138, %v2005_v28 }
 0x5a4   : > { %v2014_v51 = vmul.f32 %v3111_v59, %v2010_v3 }
 0x5a5   : > { %v2013_v26 = vmul.f32 %v3113_v22, %v2009_v61 }
 0x5a6   : > { %v2018_v27 = vadd.f32 -0.28449672, %v2014_v51 }
 0x5a7   : > { %v2017_v4 = vadd.f32 -0.28449672, %v2013_v26 }
 0x5a8   : > { %v2022_v24 = vmul.f32 %v3111_v59, %v2018_v27 }
 0x5a9   : > { %v2021_v1 = vmul.f32 %v3113_v22, %v2017_v4 }
 0x5aa   : > { %v2026_v7 = vadd.f32 0.2548296, %v2022_v24 }
 0x5ab   : > { %v2025_v49 = vadd.f32 0.2548296, %v2021_v1 }
 0x5ac   : > { %v2030_v41 = vmul.f32 %v3111_v59, %v2026_v7  ;;  %v2973_v59 = vpack.c.bf16 (!%p2695_p6), %v2285_v52, %v2284_v54 }
 0x5ad   : > { %v2029_v43 = vmul.f32 %v3113_v22, %v2025_v49  ;;  %v3186_v22 = vmov (!%p2695_p6), 0.0  }
 0x5ae   : > { %v2050_v62 = vmul.f32 %v3115_v8, %v2030_v41  ;;  %2974 = vmatpush3.bf16.msra.mxu0 (!%p2695_p6), %v2973_v59  ;;  %2980 = vmatpush3.bf16.msra.mxu1 (!%p2695_p6), %v2973_v59 }
 0x5af   : > { %v2049_v25 = vmul.f32 %v3117_v17, %v2029_v43  ;;  %2975 = vmatprep.subr.bf16.mxu0 (!%p2695_p6), %v3184_v55  ;;  %2981 = vmatprep.subr.bf16.mxu1 (!%p2695_p6), %v3184_v55 }
 0x5b0   : > { %v2054_v63 = vsub.f32 1.0, %v2050_v62 }
 0x5b1   : > { %v2053_v0 = vsub.f32 1.0, %v2049_v25 }
 0x5b2   : > { %v2058_v40 = vmul.f32 %v2054_v63, %v1974_v15  ;;  %2977 = vmatpush3.bf16.msra.mxu0 (!%p2695_p6), %v2976_v56  ;;  %2983 = vmatpush3.bf16.msra.mxu1 (!%p2695_p6), %v2976_v56 }
 0x5b3   : > { %v2057_v35 = vmul.f32 %v2053_v0, %v1973_v37 }
 0x5b4   : > { %v2062_v50 = vadd.f32 1.0, %v2058_v40 }
 0x5b5   : > { %v2061_v42 = vadd.f32 1.0, %v2057_v35 }
 0x5b6   : > { %v2066_v13 = vmul.f32 %v2062_v50, %v1962_v11 }
 0x5b7   : > { %v2065_v9 = vmul.f32 %v2061_v42, %v1961_v19  ;;  %v2696_v19 = vld [vmem:[%s4139_s28] ss:$0 sm:$0xff] (!%p2695_p6) }
 0x5b9   : > { %2883 = vmatprep.mubr.msk.f32.mxu1 %vm1279_vm3, %v2065_v9 }
 0x5ba   : > { %2884 = vmatmul.mubr.msk.f32.gmra.mrb[12].mxu1 %vm1279_vm3, %v2066_v13  ;;  %vm3185_vm3 = vmmov (!%p2695_p6), 0   ;;  %v2697_v13 = vld [vmem:[%s4140_s15] ss:$0 sm:$0xff] (!%p2695_p6) }
 0x5bb   : > { %2894 = vmatprep.mubr.msk.f32.mxu0 (!%p2695_p6), %vm3185_vm3, %v3186_v22  ;;  %2905 = vmatprep.mubr.msk.f32.mxu1 (!%p2695_p6), %vm3185_vm3, %v3186_v22 }
 0x68d   : > { %v2885_v57 = vpop.f32.mrb[12].mxu1  ;;  %2190 = sbr.rel (%p2695_p6) target bundleno = 2094 (0x82e), region = 96 }
 0x68e   : > { %v2176_v14 = vadd.f32 %v2885_v57, %v3931_v34  ;;  %v2170_v2 = vpop.f32.mrb[13].mxu1 }
 0x68f   : > { %v2171_v6 = vadd.f32 %v3931_v34, %v2170_v2  ;;  %v2193_v34 = vsel (!%p2695_p6), %vm781_vm1, %v3939_v33, 0.0 }
 0x690   : > { %v3954_v30 = vadd.f32 %v2176_v14, %v3871_v18  ;;  %2194 = vadd.xlane.f32.xlu0 (!%p2695_p6), %v2193_v34 }
 0x691   : > { %v3957_v10 = vadd.f32 %v2171_v6, %v3875_v20  ;;  %v2196_v20 = vsel (!%p2695_p6), %vm781_vm1, %v3936_v21, 0.0 }
 0x692   : > { %2186 = vst.msk [vmem:[#allocation2 + $0x18] sm:$0xff] %vm781_vm1, %v3954_v30  ;;  %v2202_v18 = vsel (!%p2695_p6), %vm781_vm1, %v3954_v30, 0.0  ;;  %v2212_v38 = vmul.f32 (!%p2695_p6), %v3954_v30, %v3954_v30 }
 0x693   : > { %2185 = vst.msk [vmem:[#allocation2 + $0x10] sm:$0xff] %vm781_vm1, %v3957_v10  ;;  %v2199_v12 = vsel (!%p2695_p6), %vm781_vm1, %v3957_v10, 0.0  ;;  %v2211_v36 = vmul.f32 (!%p2695_p6), %v3957_v10, %v3957_v10 }
 0x694   : > { %2200 = vadd.xlane.f32.xlu1 %v2199_v12  ;;  %2197 = vadd.xlane.f32.xlu0 %v2196_v20  ;;  %v2222_v23 = vsel %vm781_vm1, %v2212_v38, 0.0 }
 0x695   : > { %v2219_v31 = vsel %vm781_vm1, %v2211_v36, 0.0 }
 0x698   : > { %2203 = vadd.xlane.f32.xlu1 %v2202_v18  ;;  %2214 = vadd.xlane.f32.xlu0 %v2213_v53 }
 0x69c   : > { %2217 = vadd.xlane.f32.xlu1 %v2216_v45  ;;  %2220 = vadd.xlane.f32.xlu0 %v2219_v31 }
 0x6a0   : > { %2223 = vadd.xlane.f32.xlu1 %v2222_v23 }
 0x71d   : > { %v2195_v39 = vpop.xlane.xlu0 %2194 }
 0x71e   : > { %v2205_v29 = vmul.f32 0.03125, %v2195_v39 }
 0x720   : > { %v2233_v51 = vmul.f32 %v2205_v29, %v2205_v29  ;;  %v2229_v50 = vsub.f32 %v3939_v33, %v2205_v29 }
 0x721   : > { %v2201_v16 = vpop.xlane.xlu1 %2200  ;;  %v2198_v47 = vpop.xlane.xlu0 %2197 }
 0x722   : > { %v2206_v60 = vmul.f32 0.03125, %v2198_v47  ;;  %v2207_v44 = vmul.f32 0.03125, %v2201_v16 }
 0x724   : > { %v2234_v26 = vmul.f32 %v2206_v60, %v2206_v60  ;;  %v2235_v7 = vmul.f32 %v2207_v44, %v2207_v44  ;;  %v2230_v37 = vsub.f32 %v3936_v21, %v2206_v60  ;;  %v2231_v21 = vsub.f32 %v3957_v10, %v2207_v44  ;;  %v2288_v44 = vld [vmem:[%s4141_s30] sm:$0x1] }
 0x725   : > { %v2204_v32 = vpop.xlane.xlu1 %2203  ;;  %v2215_v61 = vpop.xlane.xlu0 %2214 }
 0x726   : > { %v2208_v28 = vmul.f32 0.03125, %v2204_v32  ;;  %v2225_v4 = vmul.f32 0.03125, %v2215_v61 }
 0x728   : > { %v2237_v1 = vsub.f32 %v2225_v4, %v2233_v51  ;;  %v2236_v49 = vmul.f32 %v2208_v28, %v2208_v28  ;;  %v2232_v57 = vsub.f32 %v3954_v30, %v2208_v28  ;;  %v2378_v51 = vld [vmem:[%s4141_s30] sm:$0x1] }
 0x729   : > { %v2218_v3 = vpop.xlane.xlu1 %2217  ;;  %v2221_v8 = vpop.xlane.xlu0 %2220 }
 0x72a   : > { %v2226_v27 = vmul.f32 0.03125, %v2218_v3  ;;  %v2241_v17 = vadd.f32 1e-05, %v2237_v1  ;;  %v2227_v25 = vmul.f32 0.03125, %v2221_v8 }
 0x72c   : > { %v2238_v24 = vsub.f32 %v2226_v27, %v2234_v26  ;;  %v2239_v15 = vsub.f32 %v2227_v25, %v2235_v7 }
 0x72d   : > { %v2224_v41 = vpop.xlane.xlu1 %2223 }
 0x72e   : > { %v2242_v43 = vadd.f32 1e-05, %v2238_v24  ;;  %v2228_v62 = vmul.f32 0.03125, %v2224_v41  ;;  %v2243_v40 = vadd.f32 1e-05, %v2239_v15 }
 0x730   : > { %3120 = vrsqrt.f32 %v2242_v43  ;;  %v2240_v63 = vsub.f32 %v2228_v62, %v2236_v49 }
 0x731   : > { %3122 = vrsqrt.f32 %v2241_v17 }
 0x732   : > { %v2244_v0 = vadd.f32 1e-05, %v2240_v63 }
 0x734   : > { %3124 = vrsqrt.f32 %v2244_v0 }
 0x735   : > { %3126 = vrsqrt.f32 %v2243_v40 }
 0x73a   : > { %v3121_v35 = vpop.eup %3120 }
 0x73b   : > { %v3123_v42 = vpop.eup %3122  ;;  %v2250_v11 = vmul.f32 %v3121_v35, %v2230_v37 }
 0x73c   : > { %v2249_v9 = vmul.f32 %v3123_v42, %v2229_v50 }
 0x73d   : > { %v2260_v14 = vmul.f32 %v2696_v19, %v2250_v11 }
 0x73e   : > { %v3125_v2 = vpop.eup %3124  ;;  %v2259_v6 = vmul.f32 %v2696_v19, %v2249_v9 }
 0x73f   : > { %v3127_v12 = vpop.eup %3126  ;;  %v2252_v33 = vmul.f32 %v3125_v2, %v2232_v57  ;;  %v2270_v34 = vadd.f32 %v2697_v13, %v2260_v14 }
 0x740   : > { %v2251_v18 = vmul.f32 %v3127_v12, %v2231_v21  ;;  %v2269_v20 = vadd.f32 %v2697_v13, %v2259_v6 }
 0x741   : > { %v2274_v48 = vsel %vm781_vm1, %v2270_v34, 0.0  ;;  %v2262_v5 = vmul.f32 %v2696_v19, %v2252_v33 }
 0x742   : > { %v2273_v45 = vsel %vm781_vm1, %v2269_v20, 0.0  ;;  %v2261_v53 = vmul.f32 %v2696_v19, %v2251_v18 }
 0x743   : > { %v2275_v38 = vadd.f32 %v2274_v48, %v2273_v45  ;;  %v2272_v36 = vadd.f32 %v2697_v13, %v2262_v5 }
 0x744   : > { %v2271_v23 = vadd.f32 %v2697_v13, %v2261_v53 }
 0x745   : > { %v2276_v30 = vrot.slane %v2275_v38, 4  ;;  %v2365_v31 = vsel %vm781_vm1, %v2272_v36, 0.0 }
 0x746   : > { %v2364_v10 = vsel %vm781_vm1, %v2271_v23, 0.0 }
 0x747   : > { %v2277_v54 = vadd.f32 %v2276_v30, %v2275_v38  ;;  %v2366_v52 = vadd.f32 %v2365_v31, %v2364_v10 }
 0x749   : > { %v2278_v58 = vrot.slane %v2277_v54, 2  ;;  %v2367_v55 = vrot.slane %v2366_v52, 4 }
 0x74b   : > { %v2279_v59 = vadd.f32 %v2278_v58, %v2277_v54  ;;  %v2368_v46 = vadd.f32 %v2367_v55, %v2366_v52 }
 0x74d   : > { %v2280_v22 = vrot.slane %v2279_v59, 1  ;;  %v2369_v56 = vrot.slane %v2368_v46, 2 }
 0x74f   : > { %v2281_v16 = vadd.f32 %v2280_v22, %v2279_v59  ;;  %v2370_v39 = vadd.f32 %v2369_v56, %v2368_v46 }
 0x751   : > { %v2283_v32 = vmul.f32 0.0625, %v2281_v16  ;;  %v2371_v47 = vrot.slane %v2370_v39, 1 }
 0x753   : > { %2895 = vmatmul.mubr.msk.f32.vlgmr.msra.gmra.mrb[0].mxu0 %vm781_vm1, %v2283_v32  ;;  %v2372_v29 = vadd.f32 %v2371_v47, %v2370_v39 }
 0x755   : > { %v2373_v60 = vmul.f32 0.0625, %v2372_v29 }
 0x757   : > { %2906 = vmatmul.mubr.msk.f32.vlgmr.msra.gmra.mrb[0].mxu1 %vm781_vm1, %v2373_v60 }
 0x826   : > { %v2358_v28 = vpop.f32.mrb[0].mxu0 }
 0x827   : > { %v2359_v3 = vadd.f32 %v2358_v28, %v2288_v44  ;;  %v2896_v61 = vpop.f32.mrb[1].mxu0 }
 0x829   : > { %2363 = vst.msk [vmem:[#allocation3] sm:$0x1] %vm2362_vm10, %v2359_v3 }
 0x82a   : > { %v2448_v26 = vpop.f32.mrb[0].mxu1 }
 0x82b   : > { %v2449_v27 = vadd.f32 %v2448_v26, %v2378_v51  ;;  %v2907_v4 = vpop.f32.mrb[1].mxu1 }
 0x82d   : > { %2452 = vst.msk [vmem:[#allocation3 + $0x1] sm:$0x1] %vm2362_vm10, %v2449_v27 }
 0x82e PF: > { %s4142_s16 = sld [smem:[#allocation7_spill]]  ;;  %s3187_s29 = smov [#allocation3]  }
 0x82f   : > { %s2462_s26 = sshll.u32 %s3187_s29, 4  ;;  %s2463_s26 = int_to_ptr.vmem [resolvable:$true] %s2462_s26 }
 0x830   : > { %s3128_s19 = scalar_lea.vmem %s2463_s26, 32  ;;  %p3135_p11 = scmp.lt.s32.totalorder %s2463_s26, %s2463_s26 }
 0x831   : > { %p3129_p8 = scmp.ne.s32.totalorder %s2463_s26, %s3128_s19  ;;  %p3136_p12 = scmp.lt.s32.totalorder %s3128_s19, %s3128_s19 }
 0x833   : > { %p3137_p13 = por %p3136_p12, %p3135_p11 }
 0x834   : > { %s4143_s1 = sadd.s32 4294967295, %s4142_s16  }
 0x835   : > { %p4020_p7 = scmp.eq.s32.totalorder %s4143_s1, 1 }
 0x837   : > { %p3130_p9 = pnand %p3129_p8, %p4020_p7 }
 0x839   : > { %p3131_p10 = pneg %p3130_p9 }
 0x83b   : > { %p3138_p0 = pnand %p3137_p13, %p3131_p10 }
 0x83d   : > { %3141 = shalt.err (!%p3138_p0)
}
 0x83e   : > { %s4145_s17 = sld [smem:[#allocation29_spill]] }
 0x844   : > { %s3142_s20 = scalar_lea.hbm %s4145_s17, 32 }
 0x845   : > { %p3143_p1 = scmp.ne.s32.totalorder %s4145_s17, %s3142_s20  ;;  %p3148_p4 = scmp.lt.u32.totalorder %s3142_s20, %s4145_s17 }
 0x847   : > { %p3144_p2 = pnand %p3143_p1, %p4020_p7 }
 0x849   : > { %p3145_p3 = pneg %p3144_p2 }
 0x84b   : > { %p3150_p5 = pnand %p3148_p4, %p3145_p3 }
 0x84d   : > { %3153 = shalt.err (!%p3150_p5)
}
 0x84e   : > { %2985 = dma.vmem_to_hbm [thread:$0]  (%p4020_p7), %s2463_s26, 32, %s4145_s17, [#allocation4]  }
 0x84f   : > { %3167 = dma.done.wait (%p4020_p7), [#allocation4], 32  }
 0x850   : > { %3169 = vsyncadd (%p4020_p7), [#allocation4], 4294967264 }
 0x851 PF: > { %s4146_s25 = sld [smem:[#allocation7_spill]]  ;;  %s4147_s24 = sld [smem:[#allocation6_spill]] }
 0x857   : > { %s28_s26 = sadd.s32 1, %s4146_s25   ;;  %s4148_s25 = sld [smem:[#allocation8_spill]] }
 0x858   : > { %p25_p6 = scmp.ge.s32.totalorder %s28_s26, 4  }
 0x85a   :  { %27 = sbr.rel (!%p25_p6) target bundleno = 13 (0xd), region = 161 }
 0x861   :  { %2475 = vsyncpa [#allocation4], 1 }
 0x862   :  { %2477 = vsyncpa [#allocation4 + $0x1], 1 }

</bundles_post_ra>
